<compile_context>
chip_gen: v7x
topology: tpu7x:2x2x1
jax: 0.10.0
libtpu: 0.0.40
codegen_flags: <defaults>
</compile_context>

<pallas_src>
import functools

import jax
import jax.numpy as jnp
from jax.experimental import pallas as pl
from jax.experimental.pallas import tpu as pltpu


def _spatial_attention_kernel(w_ref, x_ref, o_ref, pad_ref, *,
                              ksize, pad, H, W, p_left):
    """Fused channel-max + (ksize x ksize) conv (no bias) + sigmoid.

    w_ref:   (ksize*ksize,)            f32 SMEM -- flattened (1,1,k,k) conv weight
    x_ref:   (nb, tile_c, H*W)         VMEM     -- input tile (caller dtype)
    o_ref:   (nb, 1, H*W)              VMEM     -- attention-map output tile
    pad_ref: (nb, p_left + H*W + P)    f32 VMEM -- running channel max with a
                                                   zero halo, P = pad*W + pad.
    Grid: (N/nb, C/tile_c).  The trailing ('arbitrary') axis carries the
    running max in pad_ref; conv + sigmoid run on the last channel tile.
    """
    c_idx = pl.program_id(1)
    n_c = pl.num_programs(1)
    HW = H * W
    nb = x_ref.shape[0]
    P = pad * W + pad                       # max |flat offset| of a conv tap

    # --- channel max of this tile, lane-dense over H*W ----------------------
    tile_max = jnp.max(x_ref[...], axis=1).astype(jnp.float32)      # (nb, HW)

    @pl.when(c_idx == 0)
    def _init():
        # Zero only the conv halos (once per batch block), seed the interior.
        pad_ref[:, :p_left] = jnp.zeros((nb, p_left), jnp.float32)
        pad_ref[:, p_left + HW:] = jnp.zeros(
            (nb, pad_ref.shape[1] - p_left - HW), jnp.float32)
        pad_ref[:, p_left:p_left + HW] = tile_max

    @pl.when(c_idx > 0)
    def _accumulate():
        pad_ref[:, p_left:p_left + HW] = jnp.maximum(
            pad_ref[:, p_left:p_left + HW], tile_max)

    @pl.when(c_idx == n_c - 1)
    def _finalize():
        # k*k-tap multiply-accumulate on lane-dense (nb, H*W) windows.  The
        # zero halo handles the vertical (row) padding; a per-tap column mask
        # handles the horizontal padding / row wrap-around.
        col = jax.lax.broadcasted_iota(jnp.int32, (nb, HW), 1) % W
        acc = jnp.zeros((nb, HW), jnp.float32)
        for di in range(ksize):
            for dj in range(ksize):
                start = p_left - P + di * W + dj          # static, >= 0
                tap = pad_ref[:, start:start + HW]
                if dj < pad:        # window sticks out past the left edge
                    tap = jnp.where(col >= pad - dj, tap, 0.0)
                elif dj > pad:      # window sticks out past the right edge
                    tap = jnp.where(col < W - (dj - pad), tap, 0.0)
                acc = acc + w_ref[di * ksize + dj] * tap
        # Sigmoid epilogue (exp on the EUP).  pl.reciprocal(..., approx=True)
        # would make the divide ~free but loosens precision past ~1e-4.
        o_ref[:, 0, :] = (1.0 / (1.0 + jnp.exp(-acc))).astype(o_ref.dtype)


def _largest_divisor_leq(n, cap):
    cap = max(1, min(n, cap))
    for d in range(cap, 0, -1):
        if n % d == 0:
            return d
    return 1


def _choose_tiles(N, C, HW, itemsize):
    """Pick (nb, tile_c) so one input block is <= ~2 MiB (double-buffered this
    stays well inside v5e's 16 MiB scoped-VMEM default and v7x's 64 MiB
    physical VMEM) while keeping >= 2 batch grid steps for v7x megacore."""
    target = 2 * 1024 * 1024
    row_bytes = HW * itemsize
    # Channel tile: whole C if it fits, else the largest multiple-of-8 divisor.
    tile_c = C
    if C * row_bytes > target:
        start = min(C, max(8, int(target // row_bytes)))
        start -= start % 8
        for d in range(start, 0, -8):
            if C % d == 0:
                tile_c = d
                break
    # Batch tile: as many elements as fit the target, but keep >= 2 grid steps.
    nb = _largest_divisor_leq(N, max(1, int(target // (tile_c * row_bytes))))
    if N >= 2 and N // nb < 2:
        nb = _largest_divisor_leq(N, max(1, N // 2))
    return nb, tile_c


@functools.partial(jax.jit, static_argnames=("kernel_size",))
def spatial_attention(x, weight, kernel_size=7):
    """Pallas port of SpatialAttention.forward.

    x:      (N, C, H, W), float32 or bfloat16 (PyTorch NCHW layout)
    weight: (1, 1, k, k) conv weight (bias=False)
    returns (N, 1, H, W) attention map in x's dtype
    """
    assert kernel_size in (3, 7), "kernel size must be 3 or 7"
    pad = 3 if kernel_size == 7 else 1
    N, C, H, W = x.shape
    HW = H * W
    P = pad * W + pad                        # conv halo in the flattened map
    p_left = ((P + 127) // 128) * 128        # 128-aligned running-max interior

    w_flat = weight.reshape(kernel_size * kernel_size).astype(jnp.float32)
    x3 = x.reshape(N, C, HW)                 # free metadata reshape (lane-dense)

    nb, tile_c = _choose_tiles(N, C, HW, jnp.dtype(x.dtype).itemsize)

    kernel = functools.partial(
        _spatial_attention_kernel,
        ksize=kernel_size, pad=pad, H=H, W=W, p_left=p_left)

    out = pl.pallas_call(
        kernel,
        out_shape=jax.ShapeDtypeStruct((N, 1, HW), x.dtype),
        grid=(N // nb, C // tile_c),
        in_specs=[
            # conv taps: whole (k*k,) vector in SMEM, shared by all steps
            pl.BlockSpec(memory_space=pltpu.MemorySpace.SMEM),
            # nb batch elems x tile_c channels x full H*W per grid step
            pl.BlockSpec((nb, tile_c, HW), lambda n, c: (n, c, 0)),
        ],
        out_specs=pl.BlockSpec((nb, 1, HW), lambda n, c: (n, 0, 0)),
        scratch_shapes=[pltpu.VMEM((nb, p_left + HW + P), jnp.float32)],
        compiler_params=pltpu.CompilerParams(
            dimension_semantics=("parallel", "arbitrary")),
    )(w_flat, x3)

    return out.reshape(N, 1, H, W)


def _reference(x, weight, kernel_size=7):
    """Pure-JAX reference: channel max -> conv2d (zero pad, no bias) -> sigmoid."""
    pad = 3 if kernel_size == 7 else 1
    m = jnp.max(x.astype(jnp.float32), axis=1, keepdims=True)
    y = jax.lax.conv_general_dilated(
        m, weight.astype(jnp.float32), window_strides=(1, 1),
        padding=((pad, pad), (pad, pad)),
        dimension_numbers=("NCHW", "OIHW", "NCHW"),
        precision=jax.lax.Precision.HIGHEST)
    return jax.nn.sigmoid(y)


if __name__ == "__main__":
    key = jax.random.PRNGKey(0)
    kx, kw = jax.random.split(key)

    N, C, H, W = 2, 4, 16, 16
    K = 7
    x = jax.random.normal(kx, (N, C, H, W), jnp.float32)
    # deterministic stand-in for the nn.Conv2d(1, 1, 7, bias=False) weight
    weight = jax.random.normal(kw, (1, 1, K, K), jnp.float32) / jnp.sqrt(K * K)

    out = jax.block_until_ready(spatial_attention(x, weight, kernel_size=K))

    assert out.shape == (N, 1, H, W), out.shape
    assert bool(jnp.all(jnp.isfinite(out)))

    ref = _reference(x, weight, K)
    max_err = float(jnp.max(jnp.abs(out - ref)))
    assert bool(jnp.allclose(out, ref, atol=1e-4, rtol=1e-4)), max_err

    print("KERNEL_OK")
</pallas_src>

<mosaic_0001>
module attributes {stable_mosaic.version = 11 : i64} {
  func.func @_spatial_attention_kernel(%arg0: i32, %arg1: i32, %arg2: memref<49xf32, #tpu.memory_space<smem>>, %arg3: memref<1x4x256xf32, #tpu.memory_space<vmem>>, %arg4: memref<1x1x256xf32, #tpu.memory_space<vmem>>, %arg5: memref<1x435xf32, #tpu.memory_space<vmem>>) attributes {dimension_semantics = [#tpu.dimension_semantics<parallel>, #tpu.dimension_semantics<arbitrary>], iteration_bounds = array<i64: 2, 1>, scalar_prefetch = 0 : i64, scratch_operands = 1 : i64, tpu.core_type = #tpu.core_type<tc>, window_params = [{transform_indices = @transform_0, window_bounds = array<i64: 49>}, {transform_indices = @transform_1, window_bounds = array<i64: 1, 4, 256>}, {transform_indices = @transform_2, window_bounds = array<i64: 1, 1, 256>}]} {
    %c0 = arith.constant 0 : index
    %c0_0 = arith.constant 0 : index
    %c0_1 = arith.constant 0 : index
    %0 = vector.load %arg3[%c0, %c0_0, %c0_1] : memref<1x4x256xf32, #tpu.memory_space<vmem>>, vector<1x4x256xf32>
    %cst = arith.constant dense<0xFF800000> : vector<1x256xf32>
    %1 = vector.multi_reduction <maximumf>, %0, %cst [1] : vector<1x4x256xf32> to vector<1x256xf32>
    %c0_i32 = arith.constant 0 : i32
    %2 = arith.cmpi eq, %arg1, %c0_i32 : i32
    %3 = arith.extui %2 : i1 to i32
    %c0_i32_2 = arith.constant 0 : i32
    %4 = arith.cmpi ne, %3, %c0_i32_2 : i32
    scf.if %4 {
      %cst_7 = arith.constant 0.000000e+00 : f32
      %11 = vector.broadcast %cst_7 : f32 to vector<1x128xf32>
      %c0_8 = arith.constant 0 : index
      %c0_9 = arith.constant 0 : index
      %12 = vector.load %arg5[%c0_8, %c0_9] : memref<1x435xf32, #tpu.memory_space<vmem>>, vector<1x128xf32>
      tpu.vector_store %arg5[%c0_8, %c0_9], %11 {strides = array<i32>} : memref<1x435xf32, #tpu.memory_space<vmem>>, vector<1x128xf32>,
      %cst_10 = arith.constant 0.000000e+00 : f32
      %13 = vector.broadcast %cst_10 : f32 to vector<1x51xf32>
      %c0_11 = arith.constant 0 : index
      %c384 = arith.constant 384 : index
      %14 = vector.load %arg5[%c0_11, %c384] : memref<1x435xf32, #tpu.memory_space<vmem>>, vector<1x51xf32>
      tpu.vector_store %arg5[%c0_11, %c384], %13 {strides = array<i32>} : memref<1x435xf32, #tpu.memory_space<vmem>>, vector<1x51xf32>,
      %c0_12 = arith.constant 0 : index
      %c128 = arith.constant 128 : index
      %15 = vector.load %arg5[%c0_12, %c128] : memref<1x435xf32, #tpu.memory_space<vmem>>, vector<1x256xf32>
      tpu.vector_store %arg5[%c0_12, %c128], %1 {strides = array<i32>} : memref<1x435xf32, #tpu.memory_space<vmem>>, vector<1x256xf32>,
    } else {
    }
    %c0_i32_3 = arith.constant 0 : i32
    %5 = arith.cmpi sgt, %arg1, %c0_i32_3 : i32
    %6 = arith.extui %5 : i1 to i32
    %c0_i32_4 = arith.constant 0 : i32
    %7 = arith.cmpi ne, %6, %c0_i32_4 : i32
    scf.if %7 {
      %c0_7 = arith.constant 0 : index
      %c128 = arith.constant 128 : index
      %11 = vector.load %arg5[%c0_7, %c128] : memref<1x435xf32, #tpu.memory_space<vmem>>, vector<1x256xf32>
      %12 = arith.maximumf %11, %1 : vector<1x256xf32>
      %c0_8 = arith.constant 0 : index
      %c128_9 = arith.constant 128 : index
      %13 = vector.load %arg5[%c0_8, %c128_9] : memref<1x435xf32, #tpu.memory_space<vmem>>, vector<1x256xf32>
      tpu.vector_store %arg5[%c0_8, %c128_9], %12 {strides = array<i32>} : memref<1x435xf32, #tpu.memory_space<vmem>>, vector<1x256xf32>,
    } else {
    }
    %c0_i32_5 = arith.constant 0 : i32
    %8 = arith.cmpi eq, %arg1, %c0_i32_5 : i32
    %9 = arith.extui %8 : i1 to i32
    %c0_i32_6 = arith.constant 0 : i32
    %10 = arith.cmpi ne, %9, %c0_i32_6 : i32
    scf.if %10 {
      %11 = tpu.iota {dimensions = array<i32: 1>} : vector<1x256xi32>
      %c16_i32 = arith.constant 16 : i32
      %c0_i32_7 = arith.constant 0 : i32
      %12 = arith.cmpi eq, %c16_i32, %c0_i32_7 : i32
      %c1_i32 = arith.constant 1 : i32
      %13 = arith.select %12, %c1_i32, %c16_i32 : i32
      %14 = vector.broadcast %13 : i32 to vector<1x256xi32>
      %15 = arith.remsi %11, %14 : vector<1x256xi32>
      %c0_i32_8 = arith.constant 0 : i32
      %16 = vector.broadcast %c0_i32_8 : i32 to vector<1x256xi32>
      %17 = arith.cmpi ne, %15, %16 : vector<1x256xi32>
      %c0_i32_9 = arith.constant 0 : i32
      %18 = vector.broadcast %c0_i32_9 : i32 to vector<1x256xi32>
      %19 = arith.cmpi slt, %15, %18 : vector<1x256xi32>
      %c0_i32_10 = arith.constant 0 : i32
      %20 = arith.cmpi slt, %13, %c0_i32_10 : i32
      %21 = vector.broadcast %20 : i1 to vector<1x256xi1>
      %22 = vector.broadcast %21 : vector<1x256xi1> to vector<1x256xi1>
      %23 = arith.xori %19, %22 : vector<1x256xi1>
      %24 = arith.andi %23, %17 : vector<1x256xi1>
      %25 = vector.broadcast %13 : i32 to vector<1x256xi32>
      %26 = arith.addi %15, %25 : vector<1x256xi32>
      %27 = arith.select %24, %26, %15 : vector<1x256xi1>, vector<1x256xi32>
      %cst_11 = arith.constant 0.000000e+00 : f32
      %28 = vector.broadcast %cst_11 : f32 to vector<1x256xf32>
      %c0_12 = arith.constant 0 : index
      %c77 = arith.constant 77 : index
      %29 = vector.load %arg5[%c0_12, %c77] : memref<1x435xf32, #tpu.memory_space<vmem>>, vector<1x256xf32>
      %c3_i32 = arith.constant 3 : i32
      %30 = vector.broadcast %c3_i32 : i32 to vector<1x256xi32>
      %31 = arith.cmpi sge, %27, %30 : vector<1x256xi32>
      %cst_13 = arith.constant 0.000000e+00 : f32
      %32 = vector.broadcast %cst_13 : f32 to vector<1x256xf32>
      %33 = arith.select %31, %29, %32 : vector<1x256xi1>, vector<1x256xf32>
      %c0_14 = arith.constant 0 : index
      %34 = memref.load %arg2[%c0_14] : memref<49xf32, #tpu.memory_space<smem>>
      %35 = vector.broadcast %34 : f32 to vector<1x256xf32>
      %36 = arith.mulf %35, %33 : vector<1x256xf32>
      %37 = arith.addf %28, %36 : vector<1x256xf32>
      %c0_15 = arith.constant 0 : index
      %c78 = arith.constant 78 : index
      %38 = vector.load %arg5[%c0_15, %c78] : memref<1x435xf32, #tpu.memory_space<vmem>>, vector<1x256xf32>
      %c2_i32 = arith.constant 2 : i32
      %39 = vector.broadcast %c2_i32 : i32 to vector<1x256xi32>
      %40 = arith.cmpi sge, %27, %39 : vector<1x256xi32>
      %cst_16 = arith.constant 0.000000e+00 : f32
      %41 = vector.broadcast %cst_16 : f32 to vector<1x256xf32>
      %42 = arith.select %40, %38, %41 : vector<1x256xi1>, vector<1x256xf32>
      %c1 = arith.constant 1 : index
      %43 = memref.load %arg2[%c1] : memref<49xf32, #tpu.memory_space<smem>>
      %44 = vector.broadcast %43 : f32 to vector<1x256xf32>
      %45 = arith.mulf %44, %42 : vector<1x256xf32>
      %46 = arith.addf %37, %45 : vector<1x256xf32>
      %c0_17 = arith.constant 0 : index
      %c79 = arith.constant 79 : index
      %47 = vector.load %arg5[%c0_17, %c79] : memref<1x435xf32, #tpu.memory_space<vmem>>, vector<1x256xf32>
      %c1_i32_18 = arith.constant 1 : i32
      %48 = vector.broadcast %c1_i32_18 : i32 to vector<1x256xi32>
      %49 = arith.cmpi sge, %27, %48 : vector<1x256xi32>
      %cst_19 = arith.constant 0.000000e+00 : f32
      %50 = vector.broadcast %cst_19 : f32 to vector<1x256xf32>
      %51 = arith.select %49, %47, %50 : vector<1x256xi1>, vector<1x256xf32>
      %c2 = arith.constant 2 : index
      %52 = memref.load %arg2[%c2] : memref<49xf32, #tpu.memory_space<smem>>
      %53 = vector.broadcast %52 : f32 to vector<1x256xf32>
      %54 = arith.mulf %53, %51 : vector<1x256xf32>
      %55 = arith.addf %46, %54 : vector<1x256xf32>
      %c0_20 = arith.constant 0 : index
      %c80 = arith.constant 80 : index
      %56 = vector.load %arg5[%c0_20, %c80] : memref<1x435xf32, #tpu.memory_space<vmem>>, vector<1x256xf32>
      %c3 = arith.constant 3 : index
      %57 = memref.load %arg2[%c3] : memref<49xf32, #tpu.memory_space<smem>>
      %58 = vector.broadcast %57 : f32 to vector<1x256xf32>
      %59 = arith.mulf %58, %56 : vector<1x256xf32>
      %60 = arith.addf %55, %59 : vector<1x256xf32>
      %c0_21 = arith.constant 0 : index
      %c81 = arith.constant 81 : index
      %61 = vector.load %arg5[%c0_21, %c81] : memref<1x435xf32, #tpu.memory_space<vmem>>, vector<1x256xf32>
      %c15_i32 = arith.constant 15 : i32
      %62 = vector.broadcast %c15_i32 : i32 to vector<1x256xi32>
      %63 = arith.cmpi slt, %27, %62 : vector<1x256xi32>
      %cst_22 = arith.constant 0.000000e+00 : f32
      %64 = vector.broadcast %cst_22 : f32 to vector<1x256xf32>
      %65 = arith.select %63, %61, %64 : vector<1x256xi1>, vector<1x256xf32>
      %c4 = arith.constant 4 : index
      %66 = memref.load %arg2[%c4] : memref<49xf32, #tpu.memory_space<smem>>
      %67 = vector.broadcast %66 : f32 to vector<1x256xf32>
      %68 = arith.mulf %67, %65 : vector<1x256xf32>
      %69 = arith.addf %60, %68 : vector<1x256xf32>
      %c0_23 = arith.constant 0 : index
      %c82 = arith.constant 82 : index
      %70 = vector.load %arg5[%c0_23, %c82] : memref<1x435xf32, #tpu.memory_space<vmem>>, vector<1x256xf32>
      %c14_i32 = arith.constant 14 : i32
      %71 = vector.broadcast %c14_i32 : i32 to vector<1x256xi32>
      %72 = arith.cmpi slt, %27, %71 : vector<1x256xi32>
      %cst_24 = arith.constant 0.000000e+00 : f32
      %73 = vector.broadcast %cst_24 : f32 to vector<1x256xf32>
      %74 = arith.select %72, %70, %73 : vector<1x256xi1>, vector<1x256xf32>
      %c5 = arith.constant 5 : index
      %75 = memref.load %arg2[%c5] : memref<49xf32, #tpu.memory_space<smem>>
      %76 = vector.broadcast %75 : f32 to vector<1x256xf32>
      %77 = arith.mulf %76, %74 : vector<1x256xf32>
      %78 = arith.addf %69, %77 : vector<1x256xf32>
      %c0_25 = arith.constant 0 : index
      %c83 = arith.constant 83 : index
      %79 = vector.load %arg5[%c0_25, %c83] : memref<1x435xf32, #tpu.memory_space<vmem>>, vector<1x256xf32>
      %c13_i32 = arith.constant 13 : i32
      %80 = vector.broadcast %c13_i32 : i32 to vector<1x256xi32>
      %81 = arith.cmpi slt, %27, %80 : vector<1x256xi32>
      %cst_26 = arith.constant 0.000000e+00 : f32
      %82 = vector.broadcast %cst_26 : f32 to vector<1x256xf32>
      %83 = arith.select %81, %79, %82 : vector<1x256xi1>, vector<1x256xf32>
      %c6 = arith.constant 6 : index
      %84 = memref.load %arg2[%c6] : memref<49xf32, #tpu.memory_space<smem>>
      %85 = vector.broadcast %84 : f32 to vector<1x256xf32>
      %86 = arith.mulf %85, %83 : vector<1x256xf32>
      %87 = arith.addf %78, %86 : vector<1x256xf32>
      %c0_27 = arith.constant 0 : index
      %c93 = arith.constant 93 : index
      %88 = vector.load %arg5[%c0_27, %c93] : memref<1x435xf32, #tpu.memory_space<vmem>>, vector<1x256xf32>
      %c3_i32_28 = arith.constant 3 : i32
      %89 = vector.broadcast %c3_i32_28 : i32 to vector<1x256xi32>
      %90 = arith.cmpi sge, %27, %89 : vector<1x256xi32>
      %cst_29 = arith.constant 0.000000e+00 : f32
      %91 = vector.broadcast %cst_29 : f32 to vector<1x256xf32>
      %92 = arith.select %90, %88, %91 : vector<1x256xi1>, vector<1x256xf32>
      %c7 = arith.constant 7 : index
      %93 = memref.load %arg2[%c7] : memref<49xf32, #tpu.memory_space<smem>>
      %94 = vector.broadcast %93 : f32 to vector<1x256xf32>
      %95 = arith.mulf %94, %92 : vector<1x256xf32>
      %96 = arith.addf %87, %95 : vector<1x256xf32>
      %c0_30 = arith.constant 0 : index
      %c94 = arith.constant 94 : index
      %97 = vector.load %arg5[%c0_30, %c94] : memref<1x435xf32, #tpu.memory_space<vmem>>, vector<1x256xf32>
      %c2_i32_31 = arith.constant 2 : i32
      %98 = vector.broadcast %c2_i32_31 : i32 to vector<1x256xi32>
      %99 = arith.cmpi sge, %27, %98 : vector<1x256xi32>
      %cst_32 = arith.constant 0.000000e+00 : f32
      %100 = vector.broadcast %cst_32 : f32 to vector<1x256xf32>
      %101 = arith.select %99, %97, %100 : vector<1x256xi1>, vector<1x256xf32>
      %c8 = arith.constant 8 : index
      %102 = memref.load %arg2[%c8] : memref<49xf32, #tpu.memory_space<smem>>
      %103 = vector.broadcast %102 : f32 to vector<1x256xf32>
      %104 = arith.mulf %103, %101 : vector<1x256xf32>
      %105 = arith.addf %96, %104 : vector<1x256xf32>
      %c0_33 = arith.constant 0 : index
      %c95 = arith.constant 95 : index
      %106 = vector.load %arg5[%c0_33, %c95] : memref<1x435xf32, #tpu.memory_space<vmem>>, vector<1x256xf32>
      %c1_i32_34 = arith.constant 1 : i32
      %107 = vector.broadcast %c1_i32_34 : i32 to vector<1x256xi32>
      %108 = arith.cmpi sge, %27, %107 : vector<1x256xi32>
      %cst_35 = arith.constant 0.000000e+00 : f32
      %109 = vector.broadcast %cst_35 : f32 to vector<1x256xf32>
      %110 = arith.select %108, %106, %109 : vector<1x256xi1>, vector<1x256xf32>
      %c9 = arith.constant 9 : index
      %111 = memref.load %arg2[%c9] : memref<49xf32, #tpu.memory_space<smem>>
      %112 = vector.broadcast %111 : f32 to vector<1x256xf32>
      %113 = arith.mulf %112, %110 : vector<1x256xf32>
      %114 = arith.addf %105, %113 : vector<1x256xf32>
      %c0_36 = arith.constant 0 : index
      %c96 = arith.constant 96 : index
      %115 = vector.load %arg5[%c0_36, %c96] : memref<1x435xf32, #tpu.memory_space<vmem>>, vector<1x256xf32>
      %c10 = arith.constant 10 : index
      %116 = memref.load %arg2[%c10] : memref<49xf32, #tpu.memory_space<smem>>
      %117 = vector.broadcast %116 : f32 to vector<1x256xf32>
      %118 = arith.mulf %117, %115 : vector<1x256xf32>
      %119 = arith.addf %114, %118 : vector<1x256xf32>
      %c0_37 = arith.constant 0 : index
      %c97 = arith.constant 97 : index
      %120 = vector.load %arg5[%c0_37, %c97] : memref<1x435xf32, #tpu.memory_space<vmem>>, vector<1x256xf32>
      %c15_i32_38 = arith.constant 15 : i32
      %121 = vector.broadcast %c15_i32_38 : i32 to vector<1x256xi32>
      %122 = arith.cmpi slt, %27, %121 : vector<1x256xi32>
      %cst_39 = arith.constant 0.000000e+00 : f32
      %123 = vector.broadcast %cst_39 : f32 to vector<1x256xf32>
      %124 = arith.select %122, %120, %123 : vector<1x256xi1>, vector<1x256xf32>
      %c11 = arith.constant 11 : index
      %125 = memref.load %arg2[%c11] : memref<49xf32, #tpu.memory_space<smem>>
      %126 = vector.broadcast %125 : f32 to vector<1x256xf32>
      %127 = arith.mulf %126, %124 : vector<1x256xf32>
      %128 = arith.addf %119, %127 : vector<1x256xf32>
      %c0_40 = arith.constant 0 : index
      %c98 = arith.constant 98 : index
      %129 = vector.load %arg5[%c0_40, %c98] : memref<1x435xf32, #tpu.memory_space<vmem>>, vector<1x256xf32>
      %c14_i32_41 = arith.constant 14 : i32
      %130 = vector.broadcast %c14_i32_41 : i32 to vector<1x256xi32>
      %131 = arith.cmpi slt, %27, %130 : vector<1x256xi32>
      %cst_42 = arith.constant 0.000000e+00 : f32
      %132 = vector.broadcast %cst_42 : f32 to vector<1x256xf32>
      %133 = arith.select %131, %129, %132 : vector<1x256xi1>, vector<1x256xf32>
      %c12 = arith.constant 12 : index
      %134 = memref.load %arg2[%c12] : memref<49xf32, #tpu.memory_space<smem>>
      %135 = vector.broadcast %134 : f32 to vector<1x256xf32>
      %136 = arith.mulf %135, %133 : vector<1x256xf32>
      %137 = arith.addf %128, %136 : vector<1x256xf32>
      %c0_43 = arith.constant 0 : index
      %c99 = arith.constant 99 : index
      %138 = vector.load %arg5[%c0_43, %c99] : memref<1x435xf32, #tpu.memory_space<vmem>>, vector<1x256xf32>
      %c13_i32_44 = arith.constant 13 : i32
      %139 = vector.broadcast %c13_i32_44 : i32 to vector<1x256xi32>
      %140 = arith.cmpi slt, %27, %139 : vector<1x256xi32>
      %cst_45 = arith.constant 0.000000e+00 : f32
      %141 = vector.broadcast %cst_45 : f32 to vector<1x256xf32>
      %142 = arith.select %140, %138, %141 : vector<1x256xi1>, vector<1x256xf32>
      %c13 = arith.constant 13 : index
      %143 = memref.load %arg2[%c13] : memref<49xf32, #tpu.memory_space<smem>>
      %144 = vector.broadcast %143 : f32 to vector<1x256xf32>
      %145 = arith.mulf %144, %142 : vector<1x256xf32>
      %146 = arith.addf %137, %145 : vector<1x256xf32>
      %c0_46 = arith.constant 0 : index
      %c109 = arith.constant 109 : index
      %147 = vector.load %arg5[%c0_46, %c109] : memref<1x435xf32, #tpu.memory_space<vmem>>, vector<1x256xf32>
      %c3_i32_47 = arith.constant 3 : i32
      %148 = vector.broadcast %c3_i32_47 : i32 to vector<1x256xi32>
      %149 = arith.cmpi sge, %27, %148 : vector<1x256xi32>
      %cst_48 = arith.constant 0.000000e+00 : f32
      %150 = vector.broadcast %cst_48 : f32 to vector<1x256xf32>
      %151 = arith.select %149, %147, %150 : vector<1x256xi1>, vector<1x256xf32>
      %c14 = arith.constant 14 : index
      %152 = memref.load %arg2[%c14] : memref<49xf32, #tpu.memory_space<smem>>
      %153 = vector.broadcast %152 : f32 to vector<1x256xf32>
      %154 = arith.mulf %153, %151 : vector<1x256xf32>
      %155 = arith.addf %146, %154 : vector<1x256xf32>
      %c0_49 = arith.constant 0 : index
      %c110 = arith.constant 110 : index
      %156 = vector.load %arg5[%c0_49, %c110] : memref<1x435xf32, #tpu.memory_space<vmem>>, vector<1x256xf32>
      %c2_i32_50 = arith.constant 2 : i32
      %157 = vector.broadcast %c2_i32_50 : i32 to vector<1x256xi32>
      %158 = arith.cmpi sge, %27, %157 : vector<1x256xi32>
      %cst_51 = arith.constant 0.000000e+00 : f32
      %159 = vector.broadcast %cst_51 : f32 to vector<1x256xf32>
      %160 = arith.select %158, %156, %159 : vector<1x256xi1>, vector<1x256xf32>
      %c15 = arith.constant 15 : index
      %161 = memref.load %arg2[%c15] : memref<49xf32, #tpu.memory_space<smem>>
      %162 = vector.broadcast %161 : f32 to vector<1x256xf32>
      %163 = arith.mulf %162, %160 : vector<1x256xf32>
      %164 = arith.addf %155, %163 : vector<1x256xf32>
      %c0_52 = arith.constant 0 : index
      %c111 = arith.constant 111 : index
      %165 = vector.load %arg5[%c0_52, %c111] : memref<1x435xf32, #tpu.memory_space<vmem>>, vector<1x256xf32>
      %c1_i32_53 = arith.constant 1 : i32
      %166 = vector.broadcast %c1_i32_53 : i32 to vector<1x256xi32>
      %167 = arith.cmpi sge, %27, %166 : vector<1x256xi32>
      %cst_54 = arith.constant 0.000000e+00 : f32
      %168 = vector.broadcast %cst_54 : f32 to vector<1x256xf32>
      %169 = arith.select %167, %165, %168 : vector<1x256xi1>, vector<1x256xf32>
      %c16 = arith.constant 16 : index
      %170 = memref.load %arg2[%c16] : memref<49xf32, #tpu.memory_space<smem>>
      %171 = vector.broadcast %170 : f32 to vector<1x256xf32>
      %172 = arith.mulf %171, %169 : vector<1x256xf32>
      %173 = arith.addf %164, %172 : vector<1x256xf32>
      %c0_55 = arith.constant 0 : index
      %c112 = arith.constant 112 : index
      %174 = vector.load %arg5[%c0_55, %c112] : memref<1x435xf32, #tpu.memory_space<vmem>>, vector<1x256xf32>
      %c17 = arith.constant 17 : index
      %175 = memref.load %arg2[%c17] : memref<49xf32, #tpu.memory_space<smem>>
      %176 = vector.broadcast %175 : f32 to vector<1x256xf32>
      %177 = arith.mulf %176, %174 : vector<1x256xf32>
      %178 = arith.addf %173, %177 : vector<1x256xf32>
      %c0_56 = arith.constant 0 : index
      %c113 = arith.constant 113 : index
      %179 = vector.load %arg5[%c0_56, %c113] : memref<1x435xf32, #tpu.memory_space<vmem>>, vector<1x256xf32>
      %c15_i32_57 = arith.constant 15 : i32
      %180 = vector.broadcast %c15_i32_57 : i32 to vector<1x256xi32>
      %181 = arith.cmpi slt, %27, %180 : vector<1x256xi32>
      %cst_58 = arith.constant 0.000000e+00 : f32
      %182 = vector.broadcast %cst_58 : f32 to vector<1x256xf32>
      %183 = arith.select %181, %179, %182 : vector<1x256xi1>, vector<1x256xf32>
      %c18 = arith.constant 18 : index
      %184 = memref.load %arg2[%c18] : memref<49xf32, #tpu.memory_space<smem>>
      %185 = vector.broadcast %184 : f32 to vector<1x256xf32>
      %186 = arith.mulf %185, %183 : vector<1x256xf32>
      %187 = arith.addf %178, %186 : vector<1x256xf32>
      %c0_59 = arith.constant 0 : index
      %c114 = arith.constant 114 : index
      %188 = vector.load %arg5[%c0_59, %c114] : memref<1x435xf32, #tpu.memory_space<vmem>>, vector<1x256xf32>
      %c14_i32_60 = arith.constant 14 : i32
      %189 = vector.broadcast %c14_i32_60 : i32 to vector<1x256xi32>
      %190 = arith.cmpi slt, %27, %189 : vector<1x256xi32>
      %cst_61 = arith.constant 0.000000e+00 : f32
      %191 = vector.broadcast %cst_61 : f32 to vector<1x256xf32>
      %192 = arith.select %190, %188, %191 : vector<1x256xi1>, vector<1x256xf32>
      %c19 = arith.constant 19 : index
      %193 = memref.load %arg2[%c19] : memref<49xf32, #tpu.memory_space<smem>>
      %194 = vector.broadcast %193 : f32 to vector<1x256xf32>
      %195 = arith.mulf %194, %192 : vector<1x256xf32>
      %196 = arith.addf %187, %195 : vector<1x256xf32>
      %c0_62 = arith.constant 0 : index
      %c115 = arith.constant 115 : index
      %197 = vector.load %arg5[%c0_62, %c115] : memref<1x435xf32, #tpu.memory_space<vmem>>, vector<1x256xf32>
      %c13_i32_63 = arith.constant 13 : i32
      %198 = vector.broadcast %c13_i32_63 : i32 to vector<1x256xi32>
      %199 = arith.cmpi slt, %27, %198 : vector<1x256xi32>
      %cst_64 = arith.constant 0.000000e+00 : f32
      %200 = vector.broadcast %cst_64 : f32 to vector<1x256xf32>
      %201 = arith.select %199, %197, %200 : vector<1x256xi1>, vector<1x256xf32>
      %c20 = arith.constant 20 : index
      %202 = memref.load %arg2[%c20] : memref<49xf32, #tpu.memory_space<smem>>
      %203 = vector.broadcast %202 : f32 to vector<1x256xf32>
      %204 = arith.mulf %203, %201 : vector<1x256xf32>
      %205 = arith.addf %196, %204 : vector<1x256xf32>
      %c0_65 = arith.constant 0 : index
      %c125 = arith.constant 125 : index
      %206 = vector.load %arg5[%c0_65, %c125] : memref<1x435xf32, #tpu.memory_space<vmem>>, vector<1x256xf32>
      %c3_i32_66 = arith.constant 3 : i32
      %207 = vector.broadcast %c3_i32_66 : i32 to vector<1x256xi32>
      %208 = arith.cmpi sge, %27, %207 : vector<1x256xi32>
      %cst_67 = arith.constant 0.000000e+00 : f32
      %209 = vector.broadcast %cst_67 : f32 to vector<1x256xf32>
      %210 = arith.select %208, %206, %209 : vector<1x256xi1>, vector<1x256xf32>
      %c21 = arith.constant 21 : index
      %211 = memref.load %arg2[%c21] : memref<49xf32, #tpu.memory_space<smem>>
      %212 = vector.broadcast %211 : f32 to vector<1x256xf32>
      %213 = arith.mulf %212, %210 : vector<1x256xf32>
      %214 = arith.addf %205, %213 : vector<1x256xf32>
      %c0_68 = arith.constant 0 : index
      %c126 = arith.constant 126 : index
      %215 = vector.load %arg5[%c0_68, %c126] : memref<1x435xf32, #tpu.memory_space<vmem>>, vector<1x256xf32>
      %c2_i32_69 = arith.constant 2 : i32
      %216 = vector.broadcast %c2_i32_69 : i32 to vector<1x256xi32>
      %217 = arith.cmpi sge, %27, %216 : vector<1x256xi32>
      %cst_70 = arith.constant 0.000000e+00 : f32
      %218 = vector.broadcast %cst_70 : f32 to vector<1x256xf32>
      %219 = arith.select %217, %215, %218 : vector<1x256xi1>, vector<1x256xf32>
      %c22 = arith.constant 22 : index
      %220 = memref.load %arg2[%c22] : memref<49xf32, #tpu.memory_space<smem>>
      %221 = vector.broadcast %220 : f32 to vector<1x256xf32>
      %222 = arith.mulf %221, %219 : vector<1x256xf32>
      %223 = arith.addf %214, %222 : vector<1x256xf32>
      %c0_71 = arith.constant 0 : index
      %c127 = arith.constant 127 : index
      %224 = vector.load %arg5[%c0_71, %c127] : memref<1x435xf32, #tpu.memory_space<vmem>>, vector<1x256xf32>
      %c1_i32_72 = arith.constant 1 : i32
      %225 = vector.broadcast %c1_i32_72 : i32 to vector<1x256xi32>
      %226 = arith.cmpi sge, %27, %225 : vector<1x256xi32>
      %cst_73 = arith.constant 0.000000e+00 : f32
      %227 = vector.broadcast %cst_73 : f32 to vector<1x256xf32>
      %228 = arith.select %226, %224, %227 : vector<1x256xi1>, vector<1x256xf32>
      %c23 = arith.constant 23 : index
      %229 = memref.load %arg2[%c23] : memref<49xf32, #tpu.memory_space<smem>>
      %230 = vector.broadcast %229 : f32 to vector<1x256xf32>
      %231 = arith.mulf %230, %228 : vector<1x256xf32>
      %232 = arith.addf %223, %231 : vector<1x256xf32>
      %c0_74 = arith.constant 0 : index
      %c128 = arith.constant 128 : index
      %233 = vector.load %arg5[%c0_74, %c128] : memref<1x435xf32, #tpu.memory_space<vmem>>, vector<1x256xf32>
      %c24 = arith.constant 24 : index
      %234 = memref.load %arg2[%c24] : memref<49xf32, #tpu.memory_space<smem>>
      %235 = vector.broadcast %234 : f32 to vector<1x256xf32>
      %236 = arith.mulf %235, %233 : vector<1x256xf32>
      %237 = arith.addf %232, %236 : vector<1x256xf32>
      %c0_75 = arith.constant 0 : index
      %c129 = arith.constant 129 : index
      %238 = vector.load %arg5[%c0_75, %c129] : memref<1x435xf32, #tpu.memory_space<vmem>>, vector<1x256xf32>
      %c15_i32_76 = arith.constant 15 : i32
      %239 = vector.broadcast %c15_i32_76 : i32 to vector<1x256xi32>
      %240 = arith.cmpi slt, %27, %239 : vector<1x256xi32>
      %cst_77 = arith.constant 0.000000e+00 : f32
      %241 = vector.broadcast %cst_77 : f32 to vector<1x256xf32>
      %242 = arith.select %240, %238, %241 : vector<1x256xi1>, vector<1x256xf32>
      %c25 = arith.constant 25 : index
      %243 = memref.load %arg2[%c25] : memref<49xf32, #tpu.memory_space<smem>>
      %244 = vector.broadcast %243 : f32 to vector<1x256xf32>
      %245 = arith.mulf %244, %242 : vector<1x256xf32>
      %246 = arith.addf %237, %245 : vector<1x256xf32>
      %c0_78 = arith.constant 0 : index
      %c130 = arith.constant 130 : index
      %247 = vector.load %arg5[%c0_78, %c130] : memref<1x435xf32, #tpu.memory_space<vmem>>, vector<1x256xf32>
      %c14_i32_79 = arith.constant 14 : i32
      %248 = vector.broadcast %c14_i32_79 : i32 to vector<1x256xi32>
      %249 = arith.cmpi slt, %27, %248 : vector<1x256xi32>
      %cst_80 = arith.constant 0.000000e+00 : f32
      %250 = vector.broadcast %cst_80 : f32 to vector<1x256xf32>
      %251 = arith.select %249, %247, %250 : vector<1x256xi1>, vector<1x256xf32>
      %c26 = arith.constant 26 : index
      %252 = memref.load %arg2[%c26] : memref<49xf32, #tpu.memory_space<smem>>
      %253 = vector.broadcast %252 : f32 to vector<1x256xf32>
      %254 = arith.mulf %253, %251 : vector<1x256xf32>
      %255 = arith.addf %246, %254 : vector<1x256xf32>
      %c0_81 = arith.constant 0 : index
      %c131 = arith.constant 131 : index
      %256 = vector.load %arg5[%c0_81, %c131] : memref<1x435xf32, #tpu.memory_space<vmem>>, vector<1x256xf32>
      %c13_i32_82 = arith.constant 13 : i32
      %257 = vector.broadcast %c13_i32_82 : i32 to vector<1x256xi32>
      %258 = arith.cmpi slt, %27, %257 : vector<1x256xi32>
      %cst_83 = arith.constant 0.000000e+00 : f32
      %259 = vector.broadcast %cst_83 : f32 to vector<1x256xf32>
      %260 = arith.select %258, %256, %259 : vector<1x256xi1>, vector<1x256xf32>
      %c27 = arith.constant 27 : index
      %261 = memref.load %arg2[%c27] : memref<49xf32, #tpu.memory_space<smem>>
      %262 = vector.broadcast %261 : f32 to vector<1x256xf32>
      %263 = arith.mulf %262, %260 : vector<1x256xf32>
      %264 = arith.addf %255, %263 : vector<1x256xf32>
      %c0_84 = arith.constant 0 : index
      %c141 = arith.constant 141 : index
      %265 = vector.load %arg5[%c0_84, %c141] : memref<1x435xf32, #tpu.memory_space<vmem>>, vector<1x256xf32>
      %c3_i32_85 = arith.constant 3 : i32
      %266 = vector.broadcast %c3_i32_85 : i32 to vector<1x256xi32>
      %267 = arith.cmpi sge, %27, %266 : vector<1x256xi32>
      %cst_86 = arith.constant 0.000000e+00 : f32
      %268 = vector.broadcast %cst_86 : f32 to vector<1x256xf32>
      %269 = arith.select %267, %265, %268 : vector<1x256xi1>, vector<1x256xf32>
      %c28 = arith.constant 28 : index
      %270 = memref.load %arg2[%c28] : memref<49xf32, #tpu.memory_space<smem>>
      %271 = vector.broadcast %270 : f32 to vector<1x256xf32>
      %272 = arith.mulf %271, %269 : vector<1x256xf32>
      %273 = arith.addf %264, %272 : vector<1x256xf32>
      %c0_87 = arith.constant 0 : index
      %c142 = arith.constant 142 : index
      %274 = vector.load %arg5[%c0_87, %c142] : memref<1x435xf32, #tpu.memory_space<vmem>>, vector<1x256xf32>
      %c2_i32_88 = arith.constant 2 : i32
      %275 = vector.broadcast %c2_i32_88 : i32 to vector<1x256xi32>
      %276 = arith.cmpi sge, %27, %275 : vector<1x256xi32>
      %cst_89 = arith.constant 0.000000e+00 : f32
      %277 = vector.broadcast %cst_89 : f32 to vector<1x256xf32>
      %278 = arith.select %276, %274, %277 : vector<1x256xi1>, vector<1x256xf32>
      %c29 = arith.constant 29 : index
      %279 = memref.load %arg2[%c29] : memref<49xf32, #tpu.memory_space<smem>>
      %280 = vector.broadcast %279 : f32 to vector<1x256xf32>
      %281 = arith.mulf %280, %278 : vector<1x256xf32>
      %282 = arith.addf %273, %281 : vector<1x256xf32>
      %c0_90 = arith.constant 0 : index
      %c143 = arith.constant 143 : index
      %283 = vector.load %arg5[%c0_90, %c143] : memref<1x435xf32, #tpu.memory_space<vmem>>, vector<1x256xf32>
      %c1_i32_91 = arith.constant 1 : i32
      %284 = vector.broadcast %c1_i32_91 : i32 to vector<1x256xi32>
      %285 = arith.cmpi sge, %27, %284 : vector<1x256xi32>
      %cst_92 = arith.constant 0.000000e+00 : f32
      %286 = vector.broadcast %cst_92 : f32 to vector<1x256xf32>
      %287 = arith.select %285, %283, %286 : vector<1x256xi1>, vector<1x256xf32>
      %c30 = arith.constant 30 : index
      %288 = memref.load %arg2[%c30] : memref<49xf32, #tpu.memory_space<smem>>
      %289 = vector.broadcast %288 : f32 to vector<1x256xf32>
      %290 = arith.mulf %289, %287 : vector<1x256xf32>
      %291 = arith.addf %282, %290 : vector<1x256xf32>
      %c0_93 = arith.constant 0 : index
      %c144 = arith.constant 144 : index
      %292 = vector.load %arg5[%c0_93, %c144] : memref<1x435xf32, #tpu.memory_space<vmem>>, vector<1x256xf32>
      %c31 = arith.constant 31 : index
      %293 = memref.load %arg2[%c31] : memref<49xf32, #tpu.memory_space<smem>>
      %294 = vector.broadcast %293 : f32 to vector<1x256xf32>
      %295 = arith.mulf %294, %292 : vector<1x256xf32>
      %296 = arith.addf %291, %295 : vector<1x256xf32>
      %c0_94 = arith.constant 0 : index
      %c145 = arith.constant 145 : index
      %297 = vector.load %arg5[%c0_94, %c145] : memref<1x435xf32, #tpu.memory_space<vmem>>, vector<1x256xf32>
      %c15_i32_95 = arith.constant 15 : i32
      %298 = vector.broadcast %c15_i32_95 : i32 to vector<1x256xi32>
      %299 = arith.cmpi slt, %27, %298 : vector<1x256xi32>
      %cst_96 = arith.constant 0.000000e+00 : f32
      %300 = vector.broadcast %cst_96 : f32 to vector<1x256xf32>
      %301 = arith.select %299, %297, %300 : vector<1x256xi1>, vector<1x256xf32>
      %c32 = arith.constant 32 : index
      %302 = memref.load %arg2[%c32] : memref<49xf32, #tpu.memory_space<smem>>
      %303 = vector.broadcast %302 : f32 to vector<1x256xf32>
      %304 = arith.mulf %303, %301 : vector<1x256xf32>
      %305 = arith.addf %296, %304 : vector<1x256xf32>
      %c0_97 = arith.constant 0 : index
      %c146 = arith.constant 146 : index
      %306 = vector.load %arg5[%c0_97, %c146] : memref<1x435xf32, #tpu.memory_space<vmem>>, vector<1x256xf32>
      %c14_i32_98 = arith.constant 14 : i32
      %307 = vector.broadcast %c14_i32_98 : i32 to vector<1x256xi32>
      %308 = arith.cmpi slt, %27, %307 : vector<1x256xi32>
      %cst_99 = arith.constant 0.000000e+00 : f32
      %309 = vector.broadcast %cst_99 : f32 to vector<1x256xf32>
      %310 = arith.select %308, %306, %309 : vector<1x256xi1>, vector<1x256xf32>
      %c33 = arith.constant 33 : index
      %311 = memref.load %arg2[%c33] : memref<49xf32, #tpu.memory_space<smem>>
      %312 = vector.broadcast %311 : f32 to vector<1x256xf32>
      %313 = arith.mulf %312, %310 : vector<1x256xf32>
      %314 = arith.addf %305, %313 : vector<1x256xf32>
      %c0_100 = arith.constant 0 : index
      %c147 = arith.constant 147 : index
      %315 = vector.load %arg5[%c0_100, %c147] : memref<1x435xf32, #tpu.memory_space<vmem>>, vector<1x256xf32>
      %c13_i32_101 = arith.constant 13 : i32
      %316 = vector.broadcast %c13_i32_101 : i32 to vector<1x256xi32>
      %317 = arith.cmpi slt, %27, %316 : vector<1x256xi32>
      %cst_102 = arith.constant 0.000000e+00 : f32
      %318 = vector.broadcast %cst_102 : f32 to vector<1x256xf32>
      %319 = arith.select %317, %315, %318 : vector<1x256xi1>, vector<1x256xf32>
      %c34 = arith.constant 34 : index
      %320 = memref.load %arg2[%c34] : memref<49xf32, #tpu.memory_space<smem>>
      %321 = vector.broadcast %320 : f32 to vector<1x256xf32>
      %322 = arith.mulf %321, %319 : vector<1x256xf32>
      %323 = arith.addf %314, %322 : vector<1x256xf32>
      %c0_103 = arith.constant 0 : index
      %c157 = arith.constant 157 : index
      %324 = vector.load %arg5[%c0_103, %c157] : memref<1x435xf32, #tpu.memory_space<vmem>>, vector<1x256xf32>
      %c3_i32_104 = arith.constant 3 : i32
      %325 = vector.broadcast %c3_i32_104 : i32 to vector<1x256xi32>
      %326 = arith.cmpi sge, %27, %325 : vector<1x256xi32>
      %cst_105 = arith.constant 0.000000e+00 : f32
      %327 = vector.broadcast %cst_105 : f32 to vector<1x256xf32>
      %328 = arith.select %326, %324, %327 : vector<1x256xi1>, vector<1x256xf32>
      %c35 = arith.constant 35 : index
      %329 = memref.load %arg2[%c35] : memref<49xf32, #tpu.memory_space<smem>>
      %330 = vector.broadcast %329 : f32 to vector<1x256xf32>
      %331 = arith.mulf %330, %328 : vector<1x256xf32>
      %332 = arith.addf %323, %331 : vector<1x256xf32>
      %c0_106 = arith.constant 0 : index
      %c158 = arith.constant 158 : index
      %333 = vector.load %arg5[%c0_106, %c158] : memref<1x435xf32, #tpu.memory_space<vmem>>, vector<1x256xf32>
      %c2_i32_107 = arith.constant 2 : i32
      %334 = vector.broadcast %c2_i32_107 : i32 to vector<1x256xi32>
      %335 = arith.cmpi sge, %27, %334 : vector<1x256xi32>
      %cst_108 = arith.constant 0.000000e+00 : f32
      %336 = vector.broadcast %cst_108 : f32 to vector<1x256xf32>
      %337 = arith.select %335, %333, %336 : vector<1x256xi1>, vector<1x256xf32>
      %c36 = arith.constant 36 : index
      %338 = memref.load %arg2[%c36] : memref<49xf32, #tpu.memory_space<smem>>
      %339 = vector.broadcast %338 : f32 to vector<1x256xf32>
      %340 = arith.mulf %339, %337 : vector<1x256xf32>
      %341 = arith.addf %332, %340 : vector<1x256xf32>
      %c0_109 = arith.constant 0 : index
      %c159 = arith.constant 159 : index
      %342 = vector.load %arg5[%c0_109, %c159] : memref<1x435xf32, #tpu.memory_space<vmem>>, vector<1x256xf32>
      %c1_i32_110 = arith.constant 1 : i32
      %343 = vector.broadcast %c1_i32_110 : i32 to vector<1x256xi32>
      %344 = arith.cmpi sge, %27, %343 : vector<1x256xi32>
      %cst_111 = arith.constant 0.000000e+00 : f32
      %345 = vector.broadcast %cst_111 : f32 to vector<1x256xf32>
      %346 = arith.select %344, %342, %345 : vector<1x256xi1>, vector<1x256xf32>
      %c37 = arith.constant 37 : index
      %347 = memref.load %arg2[%c37] : memref<49xf32, #tpu.memory_space<smem>>
      %348 = vector.broadcast %347 : f32 to vector<1x256xf32>
      %349 = arith.mulf %348, %346 : vector<1x256xf32>
      %350 = arith.addf %341, %349 : vector<1x256xf32>
      %c0_112 = arith.constant 0 : index
      %c160 = arith.constant 160 : index
      %351 = vector.load %arg5[%c0_112, %c160] : memref<1x435xf32, #tpu.memory_space<vmem>>, vector<1x256xf32>
      %c38 = arith.constant 38 : index
      %352 = memref.load %arg2[%c38] : memref<49xf32, #tpu.memory_space<smem>>
      %353 = vector.broadcast %352 : f32 to vector<1x256xf32>
      %354 = arith.mulf %353, %351 : vector<1x256xf32>
      %355 = arith.addf %350, %354 : vector<1x256xf32>
      %c0_113 = arith.constant 0 : index
      %c161 = arith.constant 161 : index
      %356 = vector.load %arg5[%c0_113, %c161] : memref<1x435xf32, #tpu.memory_space<vmem>>, vector<1x256xf32>
      %c15_i32_114 = arith.constant 15 : i32
      %357 = vector.broadcast %c15_i32_114 : i32 to vector<1x256xi32>
      %358 = arith.cmpi slt, %27, %357 : vector<1x256xi32>
      %cst_115 = arith.constant 0.000000e+00 : f32
      %359 = vector.broadcast %cst_115 : f32 to vector<1x256xf32>
      %360 = arith.select %358, %356, %359 : vector<1x256xi1>, vector<1x256xf32>
      %c39 = arith.constant 39 : index
      %361 = memref.load %arg2[%c39] : memref<49xf32, #tpu.memory_space<smem>>
      %362 = vector.broadcast %361 : f32 to vector<1x256xf32>
      %363 = arith.mulf %362, %360 : vector<1x256xf32>
      %364 = arith.addf %355, %363 : vector<1x256xf32>
      %c0_116 = arith.constant 0 : index
      %c162 = arith.constant 162 : index
      %365 = vector.load %arg5[%c0_116, %c162] : memref<1x435xf32, #tpu.memory_space<vmem>>, vector<1x256xf32>
      %c14_i32_117 = arith.constant 14 : i32
      %366 = vector.broadcast %c14_i32_117 : i32 to vector<1x256xi32>
      %367 = arith.cmpi slt, %27, %366 : vector<1x256xi32>
      %cst_118 = arith.constant 0.000000e+00 : f32
      %368 = vector.broadcast %cst_118 : f32 to vector<1x256xf32>
      %369 = arith.select %367, %365, %368 : vector<1x256xi1>, vector<1x256xf32>
      %c40 = arith.constant 40 : index
      %370 = memref.load %arg2[%c40] : memref<49xf32, #tpu.memory_space<smem>>
      %371 = vector.broadcast %370 : f32 to vector<1x256xf32>
      %372 = arith.mulf %371, %369 : vector<1x256xf32>
      %373 = arith.addf %364, %372 : vector<1x256xf32>
      %c0_119 = arith.constant 0 : index
      %c163 = arith.constant 163 : index
      %374 = vector.load %arg5[%c0_119, %c163] : memref<1x435xf32, #tpu.memory_space<vmem>>, vector<1x256xf32>
      %c13_i32_120 = arith.constant 13 : i32
      %375 = vector.broadcast %c13_i32_120 : i32 to vector<1x256xi32>
      %376 = arith.cmpi slt, %27, %375 : vector<1x256xi32>
      %cst_121 = arith.constant 0.000000e+00 : f32
      %377 = vector.broadcast %cst_121 : f32 to vector<1x256xf32>
      %378 = arith.select %376, %374, %377 : vector<1x256xi1>, vector<1x256xf32>
      %c41 = arith.constant 41 : index
      %379 = memref.load %arg2[%c41] : memref<49xf32, #tpu.memory_space<smem>>
      %380 = vector.broadcast %379 : f32 to vector<1x256xf32>
      %381 = arith.mulf %380, %378 : vector<1x256xf32>
      %382 = arith.addf %373, %381 : vector<1x256xf32>
      %c0_122 = arith.constant 0 : index
      %c173 = arith.constant 173 : index
      %383 = vector.load %arg5[%c0_122, %c173] : memref<1x435xf32, #tpu.memory_space<vmem>>, vector<1x256xf32>
      %c3_i32_123 = arith.constant 3 : i32
      %384 = vector.broadcast %c3_i32_123 : i32 to vector<1x256xi32>
      %385 = arith.cmpi sge, %27, %384 : vector<1x256xi32>
      %cst_124 = arith.constant 0.000000e+00 : f32
      %386 = vector.broadcast %cst_124 : f32 to vector<1x256xf32>
      %387 = arith.select %385, %383, %386 : vector<1x256xi1>, vector<1x256xf32>
      %c42 = arith.constant 42 : index
      %388 = memref.load %arg2[%c42] : memref<49xf32, #tpu.memory_space<smem>>
      %389 = vector.broadcast %388 : f32 to vector<1x256xf32>
      %390 = arith.mulf %389, %387 : vector<1x256xf32>
      %391 = arith.addf %382, %390 : vector<1x256xf32>
      %c0_125 = arith.constant 0 : index
      %c174 = arith.constant 174 : index
      %392 = vector.load %arg5[%c0_125, %c174] : memref<1x435xf32, #tpu.memory_space<vmem>>, vector<1x256xf32>
      %c2_i32_126 = arith.constant 2 : i32
      %393 = vector.broadcast %c2_i32_126 : i32 to vector<1x256xi32>
      %394 = arith.cmpi sge, %27, %393 : vector<1x256xi32>
      %cst_127 = arith.constant 0.000000e+00 : f32
      %395 = vector.broadcast %cst_127 : f32 to vector<1x256xf32>
      %396 = arith.select %394, %392, %395 : vector<1x256xi1>, vector<1x256xf32>
      %c43 = arith.constant 43 : index
      %397 = memref.load %arg2[%c43] : memref<49xf32, #tpu.memory_space<smem>>
      %398 = vector.broadcast %397 : f32 to vector<1x256xf32>
      %399 = arith.mulf %398, %396 : vector<1x256xf32>
      %400 = arith.addf %391, %399 : vector<1x256xf32>
      %c0_128 = arith.constant 0 : index
      %c175 = arith.constant 175 : index
      %401 = vector.load %arg5[%c0_128, %c175] : memref<1x435xf32, #tpu.memory_space<vmem>>, vector<1x256xf32>
      %c1_i32_129 = arith.constant 1 : i32
      %402 = vector.broadcast %c1_i32_129 : i32 to vector<1x256xi32>
      %403 = arith.cmpi sge, %27, %402 : vector<1x256xi32>
      %cst_130 = arith.constant 0.000000e+00 : f32
      %404 = vector.broadcast %cst_130 : f32 to vector<1x256xf32>
      %405 = arith.select %403, %401, %404 : vector<1x256xi1>, vector<1x256xf32>
      %c44 = arith.constant 44 : index
      %406 = memref.load %arg2[%c44] : memref<49xf32, #tpu.memory_space<smem>>
      %407 = vector.broadcast %406 : f32 to vector<1x256xf32>
      %408 = arith.mulf %407, %405 : vector<1x256xf32>
      %409 = arith.addf %400, %408 : vector<1x256xf32>
      %c0_131 = arith.constant 0 : index
      %c176 = arith.constant 176 : index
      %410 = vector.load %arg5[%c0_131, %c176] : memref<1x435xf32, #tpu.memory_space<vmem>>, vector<1x256xf32>
      %c45 = arith.constant 45 : index
      %411 = memref.load %arg2[%c45] : memref<49xf32, #tpu.memory_space<smem>>
      %412 = vector.broadcast %411 : f32 to vector<1x256xf32>
      %413 = arith.mulf %412, %410 : vector<1x256xf32>
      %414 = arith.addf %409, %413 : vector<1x256xf32>
      %c0_132 = arith.constant 0 : index
      %c177 = arith.constant 177 : index
      %415 = vector.load %arg5[%c0_132, %c177] : memref<1x435xf32, #tpu.memory_space<vmem>>, vector<1x256xf32>
      %c15_i32_133 = arith.constant 15 : i32
      %416 = vector.broadcast %c15_i32_133 : i32 to vector<1x256xi32>
      %417 = arith.cmpi slt, %27, %416 : vector<1x256xi32>
      %cst_134 = arith.constant 0.000000e+00 : f32
      %418 = vector.broadcast %cst_134 : f32 to vector<1x256xf32>
      %419 = arith.select %417, %415, %418 : vector<1x256xi1>, vector<1x256xf32>
      %c46 = arith.constant 46 : index
      %420 = memref.load %arg2[%c46] : memref<49xf32, #tpu.memory_space<smem>>
      %421 = vector.broadcast %420 : f32 to vector<1x256xf32>
      %422 = arith.mulf %421, %419 : vector<1x256xf32>
      %423 = arith.addf %414, %422 : vector<1x256xf32>
      %c0_135 = arith.constant 0 : index
      %c178 = arith.constant 178 : index
      %424 = vector.load %arg5[%c0_135, %c178] : memref<1x435xf32, #tpu.memory_space<vmem>>, vector<1x256xf32>
      %c14_i32_136 = arith.constant 14 : i32
      %425 = vector.broadcast %c14_i32_136 : i32 to vector<1x256xi32>
      %426 = arith.cmpi slt, %27, %425 : vector<1x256xi32>
      %cst_137 = arith.constant 0.000000e+00 : f32
      %427 = vector.broadcast %cst_137 : f32 to vector<1x256xf32>
      %428 = arith.select %426, %424, %427 : vector<1x256xi1>, vector<1x256xf32>
      %c47 = arith.constant 47 : index
      %429 = memref.load %arg2[%c47] : memref<49xf32, #tpu.memory_space<smem>>
      %430 = vector.broadcast %429 : f32 to vector<1x256xf32>
      %431 = arith.mulf %430, %428 : vector<1x256xf32>
      %432 = arith.addf %423, %431 : vector<1x256xf32>
      %c0_138 = arith.constant 0 : index
      %c179 = arith.constant 179 : index
      %433 = vector.load %arg5[%c0_138, %c179] : memref<1x435xf32, #tpu.memory_space<vmem>>, vector<1x256xf32>
      %c13_i32_139 = arith.constant 13 : i32
      %434 = vector.broadcast %c13_i32_139 : i32 to vector<1x256xi32>
      %435 = arith.cmpi slt, %27, %434 : vector<1x256xi32>
      %cst_140 = arith.constant 0.000000e+00 : f32
      %436 = vector.broadcast %cst_140 : f32 to vector<1x256xf32>
      %437 = arith.select %435, %433, %436 : vector<1x256xi1>, vector<1x256xf32>
      %c48 = arith.constant 48 : index
      %438 = memref.load %arg2[%c48] : memref<49xf32, #tpu.memory_space<smem>>
      %439 = vector.broadcast %438 : f32 to vector<1x256xf32>
      %440 = arith.mulf %439, %437 : vector<1x256xf32>
      %441 = arith.addf %432, %440 : vector<1x256xf32>
      %cst_141 = arith.constant 0.000000e+00 : f32
      %442 = vector.broadcast %cst_141 : f32 to vector<1x256xf32>
      %443 = arith.subf %442, %441 : vector<1x256xf32>
      %444 = math.exp %443 : vector<1x256xf32>
      %cst_142 = arith.constant 1.000000e+00 : f32
      %445 = vector.broadcast %cst_142 : f32 to vector<1x256xf32>
      %446 = arith.addf %445, %444 : vector<1x256xf32>
      %cst_143 = arith.constant 1.000000e+00 : f32
      %447 = vector.broadcast %cst_143 : f32 to vector<1x256xf32>
      %448 = arith.divf %447, %446 : vector<1x256xf32>
      %c0_144 = arith.constant 0 : index
      %c0_145 = arith.constant 0 : index
      %c0_146 = arith.constant 0 : index
      %449 = vector.load %arg4[%c0_144, %c0_145, %c0_146] : memref<1x1x256xf32, #tpu.memory_space<vmem>>, vector<1x1x256xf32>
      %450 = vector.shape_cast %449 : vector<1x1x256xf32> to vector<1x256xf32>
      %451 = vector.shape_cast %448 : vector<1x256xf32> to vector<1x1x256xf32>
      tpu.vector_store %arg4[%c0_144, %c0_145, %c0_146], %451 {strides = array<i32>} : memref<1x1x256xf32, #tpu.memory_space<vmem>>, vector<1x1x256xf32>,
    } else {
    }
    return
  }
  func.func @transform_0(%arg0: i32, %arg1: i32) -> i32 {
    %c0_i32 = arith.constant 0 : i32
    %c0_i32_0 = arith.constant 0 : i32
    return %c0_i32 : i32
  }
  func.func @transform_1(%arg0: i32, %arg1: i32) -> (i32, i32, i32) {
    %c0_i32 = arith.constant 0 : i32
    %c0_i32_0 = arith.constant 0 : i32
    return %arg0, %arg1, %c0_i32 : i32, i32, i32
  }
  func.func @transform_2(%arg0: i32, %arg1: i32) -> (i32, i32, i32) {
    %c0_i32 = arith.constant 0 : i32
    %c0_i32_0 = arith.constant 0 : i32
    %c0_i32_1 = arith.constant 0 : i32
    return %arg0, %c0_i32, %c0_i32_0 : i32, i32, i32
  }
}

</mosaic_0001>

<bundles_post_ra>
// kernel: spatial_attention.1
= control target key start
LH: loop header
LB: loop body
LE: loop exit
PB: predicated region body
PF: predicated region fallthrough
CT: control target
= control target key end

     0   :  { %7 = vsyncpa [#allocation4], 0  ;;  %s1704_s9 = smov 0   ;;  %s1706_s10 = smov 0   ;;  %s2539_s0 = inlined_call_operand.vmem [shape: f32[49], index: 0, kind: input, shape index: {}]   ;;  %s2540_s1 = inlined_call_operand.vmem [shape: f32[2,4,256], index: 1, kind: input, shape index: {}]   ;;  %s2541_s2 = inlined_call_operand.vmem [shape: f32[2,1,256], index: 2, kind: output, shape index: {}]  }
   0x1   :  { %s1708_s11 = smov 0  }
   0x2 LB: > { %s1440_s12 = sadd.s32 4294967295, %s1636_s11   ;;  %s25_s13 = sadd.s32 1, %s1632_s10  ;;  %s1636_s11 = sphi %s1708_s11, %s13_s11   ;;  %s1632_s10 = sphi %s1706_s10, %s2560_s10   ;;  %s1628_s9 = sphi %s1704_s9, %s2559_s9  }
   0x3   : > { %p27_p0 = scmp.ge.s32.totalorder %s25_s13, 2  ;;  %p1442_p1 = scmp.ge.s32.totalorder %s1636_s11, 1 }
   0x4   : > { %p105_p2 = scmp.lt.s32.totalorder %s1636_s11, 3  ;;  %p1729_p4 = scmp.eq.s32.totalorder %s1440_s12, 0 }
   0x5   : > { %s2562_s13 = smov (%p27_p0, %s25_s13), 0  ;;  %s118_s18 = sshll.u32 %s2539_s0, 4  ;;  %s119_s18 = int_to_ptr.vmem [resolvable:$true] %s118_s18 }
   0x6   : > { %p1725_p3 = pnand %p1442_p1, %p105_p2  ;;  %s1595_s19 = scalar_lea.vmem %s119_s18, 16 }
   0x7   : > { %p1596_p7 = scmp.ne.s32.totalorder %s119_s18, %s1595_s19  ;;  %p1603_p11 = scmp.lt.s32.totalorder %s119_s18, %s119_s18 }
   0x8   : > { %p1505_p5 = pneg %p1725_p3  ;;  %p1604_p12 = scmp.lt.s32.totalorder %s1595_s19, %s1595_s19 }
   0xa   : > { %p1506_p6 = pnand %p1729_p4, %p1505_p5  ;;  %p1605_p13 = por %p1604_p12, %p1603_p11 }
   0xc   : > { %p1597_p8 = pneg %p1506_p6 }
   0xe   : > { %p1598_p9 = pnand %p1597_p8, %p1596_p7 }
  0x10   : > { %p1599_p10 = pneg %p1598_p9 }
  0x12   : > { %p1606_p0 = pnand %p1605_p13, %p1599_p10 }
  0x14   : > { %1609 = shalt.err (!%p1606_p0)
}
  0x15   : > { %s1638_s20 = smov [#allocation3]   ;;  %143 = sbr.rel (%p1725_p3) target bundleno = 509 (0x1fd), region = 28 }
  0x16   : > { %1508 = dma.vmem_to_smem (!%p1506_p6), %s119_s18, 16, %s1638_s20, [#allocation4]  }
  0x1c   : > { %1623 = dma.done.wait (%p1729_p4), [#allocation4], 16  }
  0x1d   : > { %1625 = vsyncadd (%p1729_p4), [#allocation4], 4294967280 }
  0x1e   : > { %149 = sfence }
  0x1f   : > { %p169_p1 = scmp.lt.s32.totalorder %s1628_s9, 1  ;;  %v205_v0 = vlaneseq  ;;  %v1639_v1 = vmov 0.0   ;;  %vm186_vm1 = vcmask 1043456   ;;  %v1640_v11 = vmov 1966171168   ;;  %s1641_s25 = smov 51  }
  0x20   : > { %v217_v12 = vunpack.c.l.s4 %v1640_v11  ;;  %s1642_s26 = smov 50   ;;  %s1643_s27 = smov 49   ;;  %vm336_vm4 = vcmask 408576   ;;  %vm315_vm5 = vcmask 416768   ;;  %vm357_vm6 = vcmask 400384  }
  0x21   : > { %s2564_s9 = smov (!%p169_p1, %s1628_s9), 1  ;;  %vm207_vm0 = vcmp.lt.s32.totalorder %v205_v0, 128  ;;  %v220_v18 = vshrl.u32 %v205_v0, 7  ;;  %vm1760_vm2 = vcmp.lt.s32.totalorder %v205_v0, 256  ;;  %vm210_vm3 = vcmp.lt.s32.totalorder %v205_v0, 51  ;;  %s1644_s28 = smov 47  }
  0x22   : > { %209 = vst.msk [vmem:[#allocation2] sm:$0x1] %vm207_vm0, %v1639_v1  ;;  %s1500_s21 = sshll.u32 %s2564_s9, 3  ;;  %v218_v17 = vunpack.c.0.s8 %v217_v12  ;;  %s1452_s29 = sld [smem:[#allocation3 + $0x3]]  ;;  %v267_v12 = vand.u32 127, %v205_v0  ;;  %vm407_vm13 = vcmask 384000  }
  0x23   : > { %s177_s24 = scalar_lea.vmem %s2540_s1, %s1500_s21  ;;  %v1767_v27 = vsub.s32 2, %v220_v18  ;;  %v1769_v28 = vsub.s32 0, %v220_v18  ;;  %v1771_v29 = vsub.s32 1, %v220_v18  ;;  %212 = vst.msk [vmem:[#allocation2 + $0x3] sm:$0x1] %vm210_vm3, %v1639_v1  ;;  %s1645_s30 = smov 46  }
  0x24   : > { %v182_v2 = vld [vmem:[%s177_s24] sm:$0xff]  ;;  %v1756_v22 = vsub.s32 %v218_v17, %v220_v18  ;;  %s1646_s3 = smov 45   ;;  %s1647_s4 = smov 35   ;;  %vm392_vm14 = vcmask 392192   ;;  %vm428_vm0 = vcmask 375808  }
  0x25   : > { %v184_v3 = vcombine.high %v182_v2, %v182_v2  ;;  %v187_v4 = vsel %vm186_vm1, %v182_v2, -inf  ;;  %s1648_s5 = smov 48   ;;  %s1459_s6 = sld [smem:[#allocation3 + $0xa]] }
  0x26   : > { %v188_v5 = vrot.slane %v187_v4, 4  ;;  %s1649_s7 = smov 34   ;;  %s1650_s8 = smov 33  }
  0x27   : > { %v194_v6 = vsel %vm186_vm1, %v184_v3, -inf  ;;  %s1651_s12 = smov 32   ;;  %s1652_s14 = smov 31  }
  0x28   : > { %v189_v7 = vmax.f32 %v187_v4, %v188_v5  ;;  %v195_v8 = vrot.slane %v194_v6, 4  ;;  %v371_v34 = vstv %s1452_s29  ;;  %s1653_s15 = smov 30   ;;  %s1654_s16 = smov 29  }
  0x29   : > { %s1466_s17 = sld [smem:[#allocation3 + $0x11]]  ;;  %s1655_s18 = smov 19  }
  0x2a   : > { %v190_v9 = vrot.slane %v189_v7, 2  ;;  %v196_v10 = vmax.f32 %v194_v6, %v195_v8  ;;  %s1656_s19 = smov 18   ;;  %s1657_s20 = smov 17  }
  0x2b   : > { %v520_v39 = vstv %s1459_s6  ;;  %s1658_s21 = smov 16   ;;  %s1659_s22 = smov 15  }
  0x2c   : > { %v191_v13 = vmax.f32 %v189_v7, %v190_v9  ;;  %v197_v14 = vrot.slane %v196_v10, 2  ;;  %s1660_s23 = smov 14   ;;  %s1661_s24 = smov 13  }
  0x2d   : > { %s1666_s29 = smov 126   ;;  %s1668_s6 = smov 115  }
  0x2e   : > { %v192_v15 = vrot.slane %v191_v13, 1  ;;  %v198_v16 = vmax.f32 %v196_v10, %v197_v14 }
  0x2f   : > { %v663_v44 = vstv %s1466_s17  ;;  %s2026_s17 = sld [smem:[#allocation3 + $0x7]] }
  0x30   : > { %v193_v19 = vmax.f32 %v191_v13, %v192_v15  ;;  %v199_v20 = vrot.slane %v198_v16, 1  ;;  %v268_v15 = vadd.s32 128, %v267_v12 }
  0x32   : > { %v200_v21 = vmax.f32 %v198_v16, %v199_v20  ;;  %v1940_v16 = vand.u32 15, %v267_v12 }
  0x34   : > { %v215_v23 = vcombine.low %v193_v19, %v200_v21  ;;  %vm328_vm7 = vcmp.ge.s32.totalorder %v1940_v16, 2  ;;  %v1952_v19 = vand.u32 15, %v268_v15  ;;  %vm294_vm8 = vcmp.ge.s32.totalorder %v1940_v16, 3 }
  0x35   : > { %vm2543_vm9 = vcmp.ge.s32.totalorder %v1940_v16, 1  ;;  %vm399_vm15 = vcmp.lt.s32.totalorder %v1940_v16, 15  ;;  %vm420_vm1 = vcmp.lt.s32.totalorder %v1940_v16, 14 }
  0x36   : > { %v222_v24 = vrot.slane %v215_v23, %v1756_v22  ;;  %vm329_vm10 = vcmp.ge.s32.totalorder %v1952_v19, 2  ;;  %vm295_vm11 = vcmp.ge.s32.totalorder %v1952_v19, 3  ;;  %vm350_vm12 = vcmp.ge.s32.totalorder %v1952_v19, 1 }
  0x37   : > { %vm400_vm3 = vcmp.lt.s32.totalorder %v1952_v19, 15 }
  0x38   : > { %v229_v26 = vrot.slane %v222_v24, %v1756_v22 }
  0x3a   : > { %233 = vst.msk [vmem:[#allocation2 + $0x1] sm:$0x3] %vm1760_vm2, %v229_v26 }
  0x41   : > { %v1773_v30 = vld [vmem:[#allocation2] sm:$0x7] }
  0x42   : > { %v1777_v31 = vrot.slane %v1773_v30, %v1767_v27  ;;  %v1781_v32 = vrot.slane %v1773_v30, %v1769_v28  ;;  %v1787_v33 = vrot.slane %v1773_v30, %v1771_v29  ;;  %v372_v35 = vmul.f32 %v371_v34, %v1773_v30  ;;  %v1885_v61 = vld [vmem:[#allocation2 + $0x1] sm:$0x7] }
  0x43   : > { %v521_v40 = vmul.f32 %v520_v39, %v1773_v30  ;;  %v664_v45 = vmul.f32 %v663_v44, %v1773_v30  ;;  %v1895_v1 = vrot.slane %v1885_v61, %v1771_v29  ;;  %v1899_v2 = vrot.slane %v1885_v61, %v1769_v28 }
  0x44   : > { %313 = vrot.lane.b32.xlu1 %v1777_v31, %s1641_s25  ;;  %309 = vrot.lane.b32.xlu0 %v1781_v32, %s1641_s25  ;;  %v377_v36 = vrot.slane %v372_v35, %v1769_v28  ;;  %v385_v37 = vrot.slane %v372_v35, %v1767_v27  ;;  %v381_v38 = vrot.slane %v372_v35, %v1771_v29 }
  0x45   : > { %v530_v41 = vrot.slane %v521_v40, %v1771_v29  ;;  %v526_v42 = vrot.slane %v521_v40, %v1769_v28  ;;  %v534_v43 = vrot.slane %v521_v40, %v1767_v27  ;;  %v669_v46 = vrot.slane %v664_v45, %v1769_v28 }
  0x46   : > { %v677_v47 = vrot.slane %v664_v45, %v1767_v27  ;;  %v673_v48 = vrot.slane %v664_v45, %v1771_v29  ;;  %v1909_v5 = vrot.slane %v1885_v61, %v1767_v27 }
  0x48   : > { %330 = vrot.lane.b32.xlu1 %v1781_v32, %s1642_s26  ;;  %311 = vrot.lane.b32.xlu0 %v1787_v33, %s1641_s25  ;;  %s1662_s25 = smov 3  }
  0x4c   : > { %334 = vrot.lane.b32.xlu1 %v1777_v31, %s1642_s26  ;;  %332 = vrot.lane.b32.xlu0 %v1787_v33, %s1642_s26  ;;  %s1663_s26 = smov 2  }
  0x50   : > { %353 = vrot.lane.b32.xlu1 %v1787_v33, %s1643_s27  ;;  %351 = vrot.lane.b32.xlu0 %v1781_v32, %s1643_s27 }
  0x54   : > { %403 = vrot.lane.b32.xlu1 %v1787_v33, %s1644_s28  ;;  %355 = vrot.lane.b32.xlu0 %v1777_v31, %s1643_s27  ;;  %s1664_s27 = smov 1  }
  0x58   : > { %422 = vrot.lane.b32.xlu1 %v1781_v32, %s1645_s30  ;;  %401 = vrot.lane.b32.xlu0 %v1781_v32, %s1644_s28 }
  0x5c   : > { %426 = vrot.lane.b32.xlu1 %v1777_v31, %s1645_s30  ;;  %405 = vrot.lane.b32.xlu0 %v1777_v31, %s1644_s28  ;;  %s1665_s28 = smov 127  }
  0x60   : > { %445 = vrot.lane.b32.xlu1 %v1787_v33, %s1646_s3  ;;  %424 = vrot.lane.b32.xlu0 %v1787_v33, %s1645_s30  ;;  %s1667_s30 = smov 125  }
  0x64   : > { %462 = vrot.lane.b32.xlu1 %v1781_v32, %s1647_s4  ;;  %443 = vrot.lane.b32.xlu0 %v1781_v32, %s1646_s3 }
  0x68   : > { %386 = vrot.lane.b32.xlu1 %v377_v36, %s1648_s5  ;;  %447 = vrot.lane.b32.xlu0 %v1777_v31, %s1646_s3  ;;  %s1930_s3 = sld [smem:[#allocation3 + $0x1]] }
  0x6c   : > { %390 = vrot.lane.b32.xlu1 %v385_v37, %s1648_s5  ;;  %388 = vrot.lane.b32.xlu0 %v381_v38, %s1648_s5  ;;  %s1938_s5 = sld [smem:[#allocation3 + $0x2]] }
  0x6e   : > { %v344_v23 = vstv %s1930_s3  ;;  %s1676_s3 = smov 98  }
  0x70   : > { %466 = vrot.lane.b32.xlu1 %v1777_v31, %s1647_s4  ;;  %464 = vrot.lane.b32.xlu0 %v1787_v33, %s1647_s4  ;;  %s1932_s4 = sld [smem:[#allocation3]] }
  0x72   : > { %v365_v34 = vstv %s1938_s5  ;;  %s2196_s5 = sld [smem:[#allocation3 + $0x12]] }
  0x74   : > { %483 = vrot.lane.b32.xlu1 %v1787_v33, %s1649_s7  ;;  %481 = vrot.lane.b32.xlu0 %v1781_v32, %s1649_s7 }
  0x76   : > { %v323_v26 = vstv %s1932_s4  ;;  %s2186_s4 = sld [smem:[#allocation3 + $0x26]] }
  0x78   : > { %500 = vrot.lane.b32.xlu1 %v1781_v32, %s1650_s8  ;;  %485 = vrot.lane.b32.xlu0 %v1777_v31, %s1649_s7  ;;  %s1967_s7 = sld [smem:[#allocation3 + $0x1f]] }
  0x7c   : > { %504 = vrot.lane.b32.xlu1 %v1777_v31, %s1650_s8  ;;  %502 = vrot.lane.b32.xlu0 %v1787_v33, %s1650_s8  ;;  %s1983_s8 = sld [smem:[#allocation3 + $0x4]] }
  0x80   : > { %537 = vrot.lane.b32.xlu1 %v530_v41, %s1651_s12  ;;  %535 = vrot.lane.b32.xlu0 %v526_v42, %s1651_s12 }
  0x84   : > { %548 = vrot.lane.b32.xlu1 %v1781_v32, %s1652_s14  ;;  %539 = vrot.lane.b32.xlu0 %v534_v43, %s1651_s12  ;;  %s1669_s12 = smov 114  }
  0x88   : > { %552 = vrot.lane.b32.xlu1 %v1777_v31, %s1652_s14  ;;  %550 = vrot.lane.b32.xlu0 %v1787_v33, %s1652_s14  ;;  %s1997_s14 = sld [smem:[#allocation3 + $0x5]] }
  0x8c   : > { %569 = vrot.lane.b32.xlu1 %v1787_v33, %s1653_s15  ;;  %567 = vrot.lane.b32.xlu0 %v1781_v32, %s1653_s15 }
  0x90   : > { %586 = vrot.lane.b32.xlu1 %v1781_v32, %s1654_s16  ;;  %571 = vrot.lane.b32.xlu0 %v1777_v31, %s1653_s15  ;;  %s1670_s15 = smov 113  }
  0x94   : > { %590 = vrot.lane.b32.xlu1 %v1777_v31, %s1654_s16  ;;  %588 = vrot.lane.b32.xlu0 %v1787_v33, %s1654_s16  ;;  %s2017_s16 = sld [smem:[#allocation3 + $0x6]] }
  0x98   : > { %607 = vrot.lane.b32.xlu1 %v1787_v33, %s1655_s18  ;;  %605 = vrot.lane.b32.xlu0 %v1781_v32, %s1655_s18 }
  0x9c   : > { %624 = vrot.lane.b32.xlu1 %v1781_v32, %s1656_s19  ;;  %609 = vrot.lane.b32.xlu0 %v1777_v31, %s1655_s18  ;;  %s1671_s18 = smov 111  }
  0xa0   : > { %628 = vrot.lane.b32.xlu1 %v1777_v31, %s1656_s19  ;;  %626 = vrot.lane.b32.xlu0 %v1787_v33, %s1656_s19  ;;  %s2062_s19 = sld [smem:[#allocation3 + $0x8]] }
  0xa4   : > { %645 = vrot.lane.b32.xlu1 %v1787_v33, %s1657_s20  ;;  %643 = vrot.lane.b32.xlu0 %v1781_v32, %s1657_s20 }
  0xa8   : > { %678 = vrot.lane.b32.xlu1 %v669_v46, %s1658_s21  ;;  %647 = vrot.lane.b32.xlu0 %v1777_v31, %s1657_s20  ;;  %s2069_s20 = sld [smem:[#allocation3 + $0x9]] }
  0xac   : > { %682 = vrot.lane.b32.xlu1 %v677_v47, %s1658_s21  ;;  %680 = vrot.lane.b32.xlu0 %v673_v48, %s1658_s21  ;;  %s1672_s21 = smov 112  }
  0xb0   : > { %693 = vrot.lane.b32.xlu1 %v1787_v33, %s1659_s22  ;;  %691 = vrot.lane.b32.xlu0 %v1781_v32, %s1659_s22 }
  0xb4   : > { %710 = vrot.lane.b32.xlu1 %v1781_v32, %s1660_s23  ;;  %695 = vrot.lane.b32.xlu0 %v1777_v31, %s1659_s22  ;;  %s2104_s22 = sld [smem:[#allocation3 + $0xb]] }
  0xb6   : > { %v1849_v49 = vpop.permute.xlu1 %313  ;;  %v1851_v50 = vpop.permute.xlu0 %309 }
  0xb8   : > { %714 = vrot.lane.b32.xlu1 %v1777_v31, %s1660_s23  ;;  %712 = vrot.lane.b32.xlu0 %v1787_v33, %s1660_s23  ;;  %s2109_s23 = sld [smem:[#allocation3 + $0xc]] }
  0xba   : > { %v1855_v51 = vpop.permute.xlu1 %330  ;;  %v1857_v52 = vpop.permute.xlu0 %311 }
  0xbb   : > { %v316_v20 = vsel %vm315_vm5, %v1851_v50, %v1857_v52  ;;  %v317_v37 = vsel %vm315_vm5, %v1857_v52, %v1849_v49  ;;  %v951_v50 = vstv %s1967_s7  ;;  %vm2542_vm5 = vcmp.lt.s32.totalorder %v1940_v16, 13  ;;  %s1678_s7 = smov 95  }
  0xbc   : > { %731 = vrot.lane.b32.xlu1 %v1787_v33, %s1661_s24  ;;  %729 = vrot.lane.b32.xlu0 %v1781_v32, %s1661_s24  ;;  %v321_v44 = vsel %vm295_vm11, %v317_v37, 0.0  ;;  %v952_v12 = vmul.f32 %v951_v50, %v1885_v61 }
  0xbe   : > { %v1861_v53 = vpop.permute.xlu1 %334  ;;  %v1863_v54 = vpop.permute.xlu0 %332 }
  0xbf   : > { %v337_v0 = vsel %vm336_vm4, %v1855_v51, %v1863_v54 }
  0xc0   : > { %748 = vrot.lane.b32.xlu1 %v1781_v32, %s1662_s25  ;;  %733 = vrot.lane.b32.xlu0 %v1777_v31, %s1661_s24  ;;  %v341_v24 = vsel %vm328_vm7, %v337_v0, 0.0  ;;  %s1673_s24 = smov 110  }
  0xc1   : > { %v345_v36 = vmul.f32 %v344_v23, %v341_v24 }
  0xc2   : > { %v1867_v55 = vpop.permute.xlu1 %353  ;;  %v1869_v56 = vpop.permute.xlu0 %351 }
  0xc3   : > { %v358_v21 = vsel %vm357_vm6, %v1869_v56, %v1867_v55  ;;  %v415_v56 = vstv %s1983_s8  ;;  %s2208_s8 = sld [smem:[#allocation3 + $0x13]] }
  0xc4   : > { %752 = vrot.lane.b32.xlu1 %v1777_v31, %s1662_s25  ;;  %750 = vrot.lane.b32.xlu0 %v1787_v33, %s1662_s25  ;;  %v362_v35 = vsel %vm2543_vm9, %v358_v21, 0.0  ;;  %v436_v21 = vstv %s1997_s14  ;;  %s2118_s25 = sld [smem:[#allocation3 + $0xd]]  ;;  %s1679_s14 = smov 96  }
  0xc5   : > { %v366_v41 = vmul.f32 %v365_v34, %v362_v35 }
  0xc6   : > { %v1873_v57 = vpop.permute.xlu1 %403  ;;  %v1875_v58 = vpop.permute.xlu0 %355 }
  0xc7   : > { %v359_v38 = vsel %vm357_vm6, %v1867_v55, %v1875_v58  ;;  %vm468_vm6 = vcmask 285696  }
  0xc8   : > { %769 = vrot.lane.b32.xlu1 %v1787_v33, %s1663_s26  ;;  %767 = vrot.lane.b32.xlu0 %v1781_v32, %s1663_s26  ;;  %v363_v46 = vsel %vm350_vm12, %v359_v38, 0.0 }
  0xc9   : > { %v367_v55 = vmul.f32 %v365_v34, %v363_v46 }
  0xca   : > { %v1879_v59 = vpop.permute.xlu1 %422  ;;  %v1881_v60 = vpop.permute.xlu0 %401 }
  0xcb   : > { %v408_v47 = vsel %vm407_vm13, %v1881_v60, %v1873_v57 }
  0xcc   : > { %786 = vrot.lane.b32.xlu1 %v1781_v32, %s1664_s27  ;;  %771 = vrot.lane.b32.xlu0 %v1777_v31, %s1663_s26  ;;  %v320_v32 = vsel %vm294_vm8, %v316_v20, 0.0  ;;  %v412_v58 = vsel %vm399_vm15, %v408_v47, 0.0  ;;  %s2128_s26 = sld [smem:[#allocation3 + $0xe]] }
  0xcd   : > { %v324_v39 = vmul.f32 %v323_v26, %v320_v32  ;;  %v416_v20 = vmul.f32 %v415_v56, %v412_v58 }
  0xce   : > { %v1887_v62 = vpop.permute.xlu1 %426  ;;  %v1889_v63 = vpop.permute.xlu0 %405 }
  0xcf   : > { %v347_v45 = vadd.f32 %v345_v36, %v324_v39  ;;  %v409_v0 = vsel %vm407_vm13, %v1873_v57, %v1889_v63  ;;  %vm421_vm13 = vcmp.lt.s32.totalorder %v1952_v19, 14 }
  0xd0   : > { %790 = vrot.lane.b32.xlu1 %v1777_v31, %s1664_s27  ;;  %788 = vrot.lane.b32.xlu0 %v1787_v33, %s1664_s27  ;;  %v338_v33 = vsel %vm336_vm4, %v1863_v54, %v1861_v53  ;;  %v325_v54 = vmul.f32 %v323_v26, %v321_v44  ;;  %vm449_vm4 = vcmask 367616   ;;  %v413_v57 = vsel %vm400_vm3, %v409_v0, 0.0  ;;  %s1674_s27 = smov 109  }
  0xd1   : > { %v342_v40 = vsel %vm329_vm10, %v338_v33, 0.0  ;;  %v368_v51 = vadd.f32 %v366_v41, %v347_v45  ;;  %v417_v39 = vmul.f32 %v415_v56, %v413_v57  ;;  %v961_v44 = vrot.slane %v952_v12, %v1771_v29 }
  0xd2   : > { %v1901_v3 = vpop.permute.xlu1 %445  ;;  %v1903_v4 = vpop.permute.xlu0 %424  ;;  %v346_v48 = vmul.f32 %v344_v23, %v342_v40 }
  0xd3   : > { %v429_v60 = vsel %vm428_vm0, %v1879_v59, %v1903_v4  ;;  %v430_v33 = vsel %vm428_vm0, %v1903_v4, %v1887_v62  ;;  %v476_v4 = vstv %s2026_s17  ;;  %vm487_vm0 = vcmask 277504   ;;  %s2237_s17 = sld [smem:[#allocation3 + $0x16]] }
  0xd4   : > { %838 = vrot.lane.b32.xlu1 %v1895_v1, %s1665_s28  ;;  %836 = vrot.lane.b32.xlu0 %v1899_v2, %s1665_s28  ;;  %v348_v15 = vadd.f32 %v346_v48, %v325_v54  ;;  %v433_v32 = vsel %vm420_vm1, %v429_v60, 0.0  ;;  %v434_v40 = vsel %vm421_vm13, %v430_v33, 0.0  ;;  %v495_v60 = vstv %s2062_s19  ;;  %s2245_s19 = sld [smem:[#allocation3 + $0x18]] }
  0xd5   : > { %v437_v35 = vmul.f32 %v436_v21, %v433_v32  ;;  %v438_v54 = vmul.f32 %v436_v21, %v434_v40 }
  0xd6   : > { %v1911_v6 = vpop.permute.xlu1 %462  ;;  %v1913_v7 = vpop.permute.xlu0 %443  ;;  %v369_v26 = vadd.f32 %v367_v55, %v348_v15 }
  0xd7   : > { %v450_v63 = vsel %vm449_vm4, %v1913_v7, %v1901_v3  ;;  %v457_v7 = vstv %s2017_s16  ;;  %s2230_s16 = sld [smem:[#allocation3 + $0x15]] }
  0xd8   : > { %855 = vrot.lane.b32.xlu1 %v1899_v2, %s1666_s29  ;;  %840 = vrot.lane.b32.xlu0 %v1909_v5, %s1665_s28  ;;  %v454_v62 = vsel %vm2542_vm5, %v450_v63, 0.0  ;;  %vm506_vm5 = vcmask 269312   ;;  %s2140_s28 = sld [smem:[#allocation3 + $0xf]] }
  0xd9   : > { %v458_v48 = vmul.f32 %v457_v7, %v454_v62 }
  0xda   : > { %v1917_v8 = vpop.permute.xlu1 %386  ;;  %v1919_v9 = vpop.permute.xlu0 %447 }
  0xdb   : > { %v451_v45 = vsel %vm449_vm4, %v1901_v3, %v1919_v9  ;;  %vm554_vm4 = vcmask 252928  }
  0xdc   : > { %859 = vrot.lane.b32.xlu1 %v1909_v5, %s1666_s29  ;;  %857 = vrot.lane.b32.xlu0 %v1895_v1, %s1666_s29  ;;  %s2161_s29 = sld [smem:[#allocation3 + $0x10]] }
  0xde   : > { %v1923_v10 = vpop.permute.xlu1 %390  ;;  %v1925_v11 = vpop.permute.xlu0 %388 }
  0xdf   : > { %v393_v49 = vsel %vm392_vm14, %v1917_v8, %v1925_v11  ;;  %v394_v59 = vsel %vm392_vm14, %v1925_v11, %v1923_v10  ;;  %v957_v11 = vrot.slane %v952_v12, %v1769_v28  ;;  %vm442_vm14 = vcmp.lt.s32.totalorder %v1952_v19, 13 }
  0xe0   : > { %876 = vrot.lane.b32.xlu1 %v1895_v1, %s1667_s30  ;;  %874 = vrot.lane.b32.xlu0 %v1899_v2, %s1667_s30  ;;  %v397_v8 = vadd.f32 %v393_v49, %v368_v51  ;;  %v398_v34 = vadd.f32 %v394_v59, %v369_v26  ;;  %v455_v9 = vsel %vm442_vm14, %v451_v45, 0.0 }
  0xe1   : > { %v459_v0 = vmul.f32 %v457_v7, %v455_v9 }
  0xe2   : > { %v1934_v13 = vpop.permute.xlu1 %466  ;;  %v1936_v14 = vpop.permute.xlu0 %464  ;;  %v418_v10 = vadd.f32 %v416_v20, %v397_v8  ;;  %v419_v46 = vadd.f32 %v417_v39, %v398_v34  ;;  %v581_v39 = vstv %s2109_s23  ;;  %s2264_s23 = sld [smem:[#allocation3 + $0x19]] }
  0xe3   : > { %v469_v36 = vsel %vm468_vm6, %v1911_v6, %v1936_v14  ;;  %v965_v6 = vrot.slane %v952_v12, %v1767_v27  ;;  %v470_v3 = vsel %vm468_vm6, %v1936_v14, %v1934_v13  ;;  %v514_v14 = vstv %s2069_s20  ;;  %s1682_s20 = smov 83  }
  0xe4   : > { %893 = vrot.lane.b32.xlu1 %v1899_v2, %s1668_s6  ;;  %878 = vrot.lane.b32.xlu0 %v1909_v5, %s1667_s30  ;;  %v439_v41 = vadd.f32 %v437_v35, %v418_v10  ;;  %v473_v47 = vsel %vm294_vm8, %v469_v36, 0.0  ;;  %v474_v13 = vsel %vm295_vm11, %v470_v3, 0.0  ;;  %vm573_vm6 = vcmask 244736   ;;  %s1675_s30 = smov 99  }
  0xe5   : > { %v477_v56 = vmul.f32 %v476_v4, %v473_v47  ;;  %v478_v32 = vmul.f32 %v476_v4, %v474_v13 }
  0xe6   : > { %v1948_v17 = vpop.permute.xlu1 %483  ;;  %v1950_v18 = vpop.permute.xlu0 %481  ;;  %v460_v55 = vadd.f32 %v458_v48, %v439_v41  ;;  %v600_v48 = vstv %s2118_s25  ;;  %s1684_s25 = smov 81  }
  0xe7   : > { %v488_v49 = vsel %vm487_vm0, %v1950_v18, %v1948_v17  ;;  %v440_v18 = vadd.f32 %v438_v54, %v419_v46 }
  0xe8   : > { %897 = vrot.lane.b32.xlu1 %v1909_v5, %s1668_s6  ;;  %895 = vrot.lane.b32.xlu0 %v1895_v1, %s1668_s6  ;;  %v492_v8 = vsel %vm328_vm7, %v488_v49, 0.0  ;;  %v479_v21 = vadd.f32 %v477_v56, %v460_v55  ;;  %v619_v56 = vstv %s2128_s26  ;;  %s1677_s6 = smov 97   ;;  %s2281_s26 = sld [smem:[#allocation3 + $0x1a]] }
  0xe9   : > { %v496_v59 = vmul.f32 %v495_v60, %v492_v8  ;;  %v461_v26 = vadd.f32 %v459_v0, %v440_v18 }
  0xea   : > { %v1971_v30 = vpop.permute.xlu1 %500  ;;  %v1973_v31 = vpop.permute.xlu0 %485 }
  0xeb   : > { %v498_v33 = vadd.f32 %v496_v59, %v479_v21  ;;  %v480_v7 = vadd.f32 %v478_v32, %v461_v26 }
  0xec   : > { %914 = vrot.lane.b32.xlu1 %v1895_v1, %s1669_s12  ;;  %912 = vrot.lane.b32.xlu0 %v1899_v2, %s1669_s12 }
  0xee   : > { %v1999_v42 = vpop.permute.xlu1 %504  ;;  %v2001_v43 = vpop.permute.xlu0 %502 }
  0xef   : > { %v507_v58 = vsel %vm506_vm5, %v1971_v30, %v2001_v43  ;;  %v489_v30 = vsel %vm487_vm0, %v1948_v17, %v1973_v31  ;;  %v508_v17 = vsel %vm506_vm5, %v2001_v43, %v1999_v42  ;;  %vm541_vm0 = vcmask 261120  }
  0xf0   : > { %931 = vrot.lane.b32.xlu1 %v1899_v2, %s1670_s15  ;;  %916 = vrot.lane.b32.xlu0 %v1909_v5, %s1669_s12  ;;  %v511_v20 = vsel %vm2543_vm9, %v507_v58, 0.0  ;;  %v493_v57 = vsel %vm329_vm10, %v489_v30, 0.0  ;;  %vm592_vm9 = vcmask 236544   ;;  %v512_v43 = vsel %vm350_vm12, %v508_v17, 0.0  ;;  %s2217_s12 = sld [smem:[#allocation3 + $0x14]] }
  0xf1   : > { %v515_v31 = vmul.f32 %v514_v14, %v511_v20  ;;  %v497_v42 = vmul.f32 %v495_v60, %v493_v57  ;;  %vm611_vm5 = vcmask 154624   ;;  %v516_v45 = vmul.f32 %v514_v14, %v512_v43 }
  0xf2   : > { %v2019_v52 = vpop.permute.xlu1 %537  ;;  %v2021_v53 = vpop.permute.xlu0 %535  ;;  %v638_v30 = vstv %s2140_s28  ;;  %s1685_s28 = smov 79  }
  0xf3   : > { %v517_v36 = vadd.f32 %v515_v31, %v498_v33  ;;  %v542_v40 = vsel %vm541_vm0, %v2021_v53, %v2019_v52  ;;  %v499_v47 = vadd.f32 %v497_v42, %v480_v7  ;;  %v657_v42 = vstv %s2161_s29  ;;  %s1686_s29 = smov 80  }
  0xf4   : > { %935 = vrot.lane.b32.xlu1 %v1909_v5, %s1670_s15  ;;  %933 = vrot.lane.b32.xlu0 %v1895_v1, %s1670_s15  ;;  %s1680_s15 = smov 94  }
  0xf5   : > { %v518_v58 = vadd.f32 %v516_v45, %v499_v47 }
  0xf6   : > { %v2043_v23 = vpop.permute.xlu1 %548  ;;  %v2045_v24 = vpop.permute.xlu0 %539 }
  0xf7   : > { %v543_v55 = vsel %vm541_vm0, %v2019_v52, %v2045_v24  ;;  %vm2549_vm0 = vcmp.ge.s32.totalorder %v1940_v16, 1 }
  0xf8   : > { %981 = vrot.lane.b32.xlu1 %v1895_v1, %s1671_s18  ;;  %979 = vrot.lane.b32.xlu0 %v1899_v2, %s1671_s18  ;;  %v547_v14 = vadd.f32 %v543_v55, %v518_v58 }
  0xfa   : > { %v2071_v37 = vpop.permute.xlu1 %552  ;;  %v2073_v38 = vpop.permute.xlu0 %550 }
  0xfb   : > { %v555_v63 = vsel %vm554_vm4, %v2043_v23, %v2073_v38  ;;  %v562_v23 = vstv %s2104_s22  ;;  %v556_v41 = vsel %vm554_vm4, %v2073_v38, %v2071_v37  ;;  %v546_v37 = vadd.f32 %v542_v40, %v517_v36  ;;  %s2261_s22 = sld [smem:[#allocation3 + $0x2d]] }
  0xfc   : > { %966 = vrot.lane.b32.xlu1 %v957_v11, %s1672_s21  ;;  %983 = vrot.lane.b32.xlu0 %v1909_v5, %s1671_s18  ;;  %v559_v35 = vsel %vm399_vm15, %v555_v63, 0.0  ;;  %v560_v38 = vsel %vm400_vm3, %v556_v41, 0.0  ;;  %vm2548_vm4 = vcmp.lt.s32.totalorder %v1940_v16, 13  ;;  %s1681_s18 = smov 93  }
  0xfd   : > { %v563_v46 = vmul.f32 %v562_v23, %v559_v35  ;;  %v564_v13 = vmul.f32 %v562_v23, %v560_v38 }
  0xfe   : > { %v2091_v50 = vpop.permute.xlu1 %569  ;;  %v568_v51 = vpop.permute.xlu0 %567 }
  0xff   : > { %v574_v34 = vsel %vm573_vm6, %v568_v51, %v2091_v50  ;;  %v565_v18 = vadd.f32 %v563_v46, %v546_v37  ;;  %v566_v31 = vadd.f32 %v564_v13, %v547_v14  ;;  %v1094_v37 = vstv %s2186_s4  ;;  %s1687_s4 = smov 78  }
 0x100   : > { %970 = vrot.lane.b32.xlu1 %v965_v6, %s1672_s21  ;;  %968 = vrot.lane.b32.xlu0 %v961_v44, %s1672_s21  ;;  %v578_v6 = vsel %vm420_vm1, %v574_v34, 0.0  ;;  %s2254_s21 = sld [smem:[#allocation3 + $0x17]] }
 0x101   : > { %v582_v51 = vmul.f32 %v581_v39, %v578_v6 }
 0x102   : > { %v587_v12 = vpop.permute.xlu1 %586  ;;  %v572_v15 = vpop.permute.xlu0 %571 }
 0x103   : > { %v575_v53 = vsel %vm573_vm6, %v2091_v50, %v572_v15  ;;  %vm630_vm6 = vcmask 146432  }
 0x104   : > { %1000 = vrot.lane.b32.xlu1 %v1895_v1, %s1673_s24  ;;  %998 = vrot.lane.b32.xlu0 %v1899_v2, %s1673_s24  ;;  %v579_v60 = vsel %vm421_vm13, %v575_v53, 0.0 }
 0x105   : > { %v583_v21 = vmul.f32 %v581_v39, %v579_v60 }
 0x106   : > { %v591_v10 = vpop.permute.xlu1 %590  ;;  %v589_v11 = vpop.permute.xlu0 %588 }
 0x107   : > { %v593_v44 = vsel %vm592_vm9, %v587_v12, %v589_v11  ;;  %v594_v50 = vsel %vm592_vm9, %v589_v11, %v591_v10  ;;  %v584_v12 = vadd.f32 %v582_v51, %v565_v18  ;;  %vm649_vm9 = vcmask 138240  }
 0x108   : > { %1017 = vrot.lane.b32.xlu1 %v1899_v2, %s1674_s27  ;;  %1002 = vrot.lane.b32.xlu0 %v1909_v5, %s1673_s24  ;;  %v597_v54 = vsel %vm2548_vm4, %v593_v44, 0.0  ;;  %v598_v15 = vsel %vm442_vm14, %v594_v50, 0.0  ;;  %v585_v23 = vadd.f32 %v583_v21, %v566_v31  ;;  %vm697_vm4 = vcmask 121856   ;;  %s1683_s24 = smov 82  }
 0x109   : > { %v601_v52 = vmul.f32 %v600_v48, %v597_v54  ;;  %v602_v63 = vmul.f32 %v600_v48, %v598_v15  ;;  %v1095_v50 = vmul.f32 %v1094_v37, %v1885_v61  ;;  %v705_v18 = vstv %s2196_s5  ;;  %s1688_s5 = smov 77  }
 0x10a   : > { %v608_v62 = vpop.permute.xlu1 %607  ;;  %v606_v4 = vpop.permute.xlu0 %605 }
 0x10b   : > { %v612_v49 = vsel %vm611_vm5, %v606_v4, %v608_v62  ;;  %v603_v10 = vadd.f32 %v601_v52, %v584_v12  ;;  %v1104_v52 = vrot.slane %v1095_v50, %v1771_v29  ;;  %v1108_v21 = vrot.slane %v1095_v50, %v1767_v27 }
 0x10c   : > { %1021 = vrot.lane.b32.xlu1 %v1909_v5, %s1674_s27  ;;  %1019 = vrot.lane.b32.xlu0 %v1895_v1, %s1674_s27  ;;  %v616_v8 = vsel %vm294_vm8, %v612_v49, 0.0  ;;  %s2290_s27 = sld [smem:[#allocation3 + $0x1b]] }
 0x10d   : > { %v620_v59 = vmul.f32 %v619_v56, %v616_v8 }
 0x10e   : > { %v625_v3 = vpop.permute.xlu1 %624  ;;  %v610_v9 = vpop.permute.xlu0 %609 }
 0x10f   : > { %v613_v24 = vsel %vm611_vm5, %v608_v62, %v610_v9  ;;  %v622_v35 = vadd.f32 %v620_v59, %v603_v10  ;;  %v604_v62 = vadd.f32 %v602_v63, %v585_v23  ;;  %vm684_vm5 = vcmask 130048  }
 0x110   : > { %1038 = vrot.lane.b32.xlu1 %v1895_v1, %s1675_s30  ;;  %1036 = vrot.lane.b32.xlu0 %v1899_v2, %s1675_s30  ;;  %v617_v57 = vsel %vm295_vm11, %v613_v24, 0.0  ;;  %v1100_v24 = vrot.slane %v1095_v50, %v1769_v28 }
 0x111   : > { %v621_v7 = vmul.f32 %v619_v56, %v617_v57 }
 0x112   : > { %v629_v0 = vpop.permute.xlu1 %628  ;;  %v627_v20 = vpop.permute.xlu0 %626 }
 0x113   : > { %v631_v26 = vsel %vm630_vm6, %v625_v3, %v627_v20  ;;  %v632_v32 = vsel %vm630_vm6, %v627_v20, %v629_v0  ;;  %v623_v45 = vadd.f32 %v621_v7, %v604_v62  ;;  %vm716_vm6 = vcmask 113664  }
 0x114   : > { %v635_v17 = vsel %vm328_vm7, %v631_v26, 0.0  ;;  %1055 = vrot.lane.b32.xlu1 %v1899_v2, %s1676_s3  ;;  %1040 = vrot.lane.b32.xlu0 %v1909_v5, %s1675_s30  ;;  %v636_v33 = vsel %vm329_vm10, %v632_v32, 0.0  ;;  %v724_v32 = vstv %s2208_s8  ;;  %s2307_s30 = sld [smem:[#allocation3 + $0x1c]]  ;;  %s2365_s8 = sld [smem:[#allocation3 + $0x21]] }
 0x115   : > { %v639_v11 = vmul.f32 %v638_v30, %v635_v17  ;;  %v640_v4 = vmul.f32 %v638_v30, %v636_v33 }
 0x116   : > { %v646_v34 = vpop.permute.xlu1 %645  ;;  %v644_v43 = vpop.permute.xlu0 %643 }
 0x117   : > { %v650_v36 = vsel %vm649_vm9, %v644_v43, %v646_v34  ;;  %v641_v40 = vadd.f32 %v639_v11, %v622_v35  ;;  %v642_v48 = vadd.f32 %v640_v4, %v623_v45  ;;  %v743_v43 = vstv %s2217_s12  ;;  %s2371_s12 = sld [smem:[#allocation3 + $0x22]] }
 0x118   : > { %v654_v39 = vsel %vm2549_vm0, %v650_v36, 0.0  ;;  %1059 = vrot.lane.b32.xlu1 %v1909_v5, %s1676_s3  ;;  %1057 = vrot.lane.b32.xlu0 %v1895_v1, %s1676_s3  ;;  %vm2550_vm0 = vcmp.lt.s32.totalorder %v1940_v16, 13  ;;  %s2312_s3 = sld [smem:[#allocation3 + $0x1d]] }
 0x119   : > { %v658_v41 = vmul.f32 %v657_v42, %v654_v39 }
 0x11a   : > { %v679_v6 = vpop.permute.xlu1 %678  ;;  %v648_v44 = vpop.permute.xlu0 %647 }
 0x11b   : > { %v651_v46 = vsel %vm649_vm9, %v646_v34, %v648_v44  ;;  %v660_v47 = vadd.f32 %v658_v41, %v641_v40  ;;  %vm735_vm9 = vcmask 105472  }
 0x11c   : > { %v655_v53 = vsel %vm350_vm12, %v651_v46, 0.0  ;;  %1076 = vrot.lane.b32.xlu1 %v1895_v1, %s1677_s6  ;;  %1074 = vrot.lane.b32.xlu0 %v1899_v2, %s1677_s6 }
 0x11d   : > { %v659_v49 = vmul.f32 %v657_v42, %v655_v53 }
 0x11e   : > { %v683_v38 = vpop.permute.xlu1 %682  ;;  %v681_v51 = vpop.permute.xlu0 %680 }
 0x11f   : > { %v661_v54 = vadd.f32 %v659_v49, %v642_v48  ;;  %v685_v3 = vsel %vm684_vm5, %v679_v6, %v681_v51  ;;  %v686_v9 = vsel %vm684_vm5, %v681_v51, %v683_v38  ;;  %vm754_vm5 = vcmask 23552  }
 0x120   : > { %v689_v55 = vadd.f32 %v685_v3, %v660_v47  ;;  %1122 = vrot.lane.b32.xlu1 %v1899_v2, %s1678_s7  ;;  %1078 = vrot.lane.b32.xlu0 %v1909_v5, %s1677_s6  ;;  %v762_v47 = vstv %s2230_s16  ;;  %s1479_s6 = sld [smem:[#allocation3 + $0x1e]]  ;;  %s2386_s16 = sld [smem:[#allocation3 + $0x25]] }
 0x121   : > { %v690_v56 = vadd.f32 %v686_v9, %v661_v54 }
 0x122   : > { %v694_v58 = vpop.permute.xlu1 %693  ;;  %v692_v60 = vpop.permute.xlu0 %691 }
 0x123   : > { %v698_v8 = vsel %vm697_vm4, %v692_v60, %v694_v58 }
 0x124   : > { %v702_v13 = vsel %vm399_vm15, %v698_v8, 0.0  ;;  %1126 = vrot.lane.b32.xlu1 %v1909_v5, %s1678_s7  ;;  %1124 = vrot.lane.b32.xlu0 %v1895_v1, %s1678_s7  ;;  %s1481_s7 = sld [smem:[#allocation3 + $0x20]] }
 0x125   : > { %v706_v14 = vmul.f32 %v705_v18, %v702_v13 }
 0x126   : > { %v711_v12 = vpop.permute.xlu1 %710  ;;  %v696_v15 = vpop.permute.xlu0 %695 }
 0x127   : > { %v708_v0 = vadd.f32 %v706_v14, %v689_v55  ;;  %v699_v30 = vsel %vm697_vm4, %v694_v58, %v696_v15  ;;  %vm773_vm4 = vcmask 15360   ;;  %v781_v55 = vstv %s2237_s17  ;;  %s2397_s17 = sld [smem:[#allocation3 + $0x27]] }
 0x128   : > { %v703_v20 = vsel %vm400_vm3, %v699_v30, 0.0  ;;  %1111 = vrot.lane.b32.xlu1 %v1104_v52, %s1679_s14  ;;  %1109 = vrot.lane.b32.xlu0 %v1100_v24, %s1679_s14  ;;  %v805_v24 = vld [vmem:[#allocation2 + $0x1] sm:$0x3]  ;;  %v807_v14 = vstv %s2245_s19  ;;  %s2406_s19 = sld [smem:[#allocation3 + $0x29]] }
 0x129   : > { %v707_v59 = vmul.f32 %v705_v18, %v703_v20  ;;  %v808_v20 = vmul.f32 %v807_v14, %v805_v24 }
 0x12a   : > { %v715_v26 = vpop.permute.xlu1 %714  ;;  %v713_v57 = vpop.permute.xlu0 %712 }
 0x12b   : > { %v709_v17 = vadd.f32 %v707_v59, %v690_v56  ;;  %v717_v31 = vsel %vm716_vm6, %v711_v12, %v713_v57  ;;  %v718_v63 = vsel %vm716_vm6, %v713_v57, %v715_v26  ;;  %vm792_vm6 = vcmask 7168  }
 0x12c   : > { %v721_v10 = vsel %vm420_vm1, %v717_v31, 0.0  ;;  %v722_v11 = vsel %vm421_vm13, %v718_v63, 0.0  ;;  %1141 = vrot.lane.b32.xlu1 %v1899_v2, %s1680_s15  ;;  %1113 = vrot.lane.b32.xlu0 %v1108_v21, %s1679_s14  ;;  %v800_v59 = vstv %s2254_s21  ;;  %s2373_s14 = sld [smem:[#allocation3 + $0x23]] }
 0x12d   : > { %v725_v33 = vmul.f32 %v724_v32, %v721_v10  ;;  %v726_v34 = vmul.f32 %v724_v32, %v722_v11  ;;  %s2434_s21 = sld [smem:[#allocation3 + $0x2b]] }
 0x12e   : > { %v732_v42 = vpop.permute.xlu1 %731  ;;  %v730_v23 = vpop.permute.xlu0 %729 }
 0x12f   : > { %v727_v35 = vadd.f32 %v725_v33, %v708_v0  ;;  %v728_v7 = vadd.f32 %v726_v34, %v709_v17  ;;  %v736_v36 = vsel %vm735_vm9, %v730_v23, %v732_v42  ;;  %v813_v33 = vrot.slane %v808_v20, %v1769_v28 }
 0x130   : > { %v740_v39 = vsel %vm2550_vm0, %v736_v36, 0.0  ;;  %1145 = vrot.lane.b32.xlu1 %v1909_v5, %s1680_s15  ;;  %1143 = vrot.lane.b32.xlu0 %v1895_v1, %s1680_s15  ;;  %vm842_vm0 = vcmask 1039360   ;;  %v1237_v34 = vstv %s2261_s22  ;;  %s2379_s15 = sld [smem:[#allocation3 + $0x24]] }
 0x131   : > { %v744_v62 = vmul.f32 %v743_v43, %v740_v39  ;;  %s2464_s22 = sld [smem:[#allocation3 + $0x2c]] }
 0x132   : > { %v749_v4 = vpop.permute.xlu1 %748  ;;  %v734_v40 = vpop.permute.xlu0 %733 }
 0x133   : > { %v746_v41 = vadd.f32 %v744_v62, %v727_v35  ;;  %v737_v6 = vsel %vm735_vm9, %v732_v42, %v734_v40  ;;  %vm2551_vm9 = vcmp.ge.s32.totalorder %v1940_v16, 1  ;;  %v1238_v62 = vmul.f32 %v1237_v34, %v1885_v61 }
 0x134   : > { %v741_v44 = vsel %vm442_vm14, %v737_v6, 0.0  ;;  %1162 = vrot.lane.b32.xlu1 %v1895_v1, %s1681_s18  ;;  %1160 = vrot.lane.b32.xlu0 %v1899_v2, %s1681_s18  ;;  %v926_v34 = vstv %s2312_s3 }
 0x135   : > { %v745_v45 = vmul.f32 %v743_v43, %v741_v44  ;;  %v850_v43 = vstv %s2264_s23  ;;  %v1243_v61 = vrot.slane %v1238_v62, %v1769_v28  ;;  %v1251_v28 = vrot.slane %v1238_v62, %v1767_v27  ;;  %s2495_s23 = sld [smem:[#allocation3 + $0x2e]] }
 0x136   : > { %v753_v46 = vpop.permute.xlu1 %752  ;;  %v751_v53 = vpop.permute.xlu0 %750 }
 0x137   : > { %v747_v48 = vadd.f32 %v745_v45, %v728_v7  ;;  %v755_v49 = vsel %vm754_vm5, %v749_v4, %v751_v53  ;;  %v756_v37 = vsel %vm754_vm5, %v751_v53, %v753_v46  ;;  %vm861_vm5 = vcmask 1031168  }
 0x138   : > { %v759_v38 = vsel %vm294_vm8, %v755_v49, 0.0  ;;  %v760_v51 = vsel %vm295_vm11, %v756_v37, 0.0  ;;  %1179 = vrot.lane.b32.xlu1 %v1899_v2, %s1682_s20  ;;  %1164 = vrot.lane.b32.xlu0 %v1909_v5, %s1681_s18  ;;  %v869_v37 = vstv %s2281_s26  ;;  %s2399_s18 = sld [smem:[#allocation3 + $0x28]]  ;;  %s1449_s26 = sshll.u32 %s2564_s9, 1 }
 0x139   : > { %v763_v54 = vmul.f32 %v762_v47, %v759_v38  ;;  %v764_v3 = vmul.f32 %v762_v47, %v760_v51 }
 0x13a   : > { %v770_v9 = vpop.permute.xlu1 %769  ;;  %v768_v50 = vpop.permute.xlu0 %767 }
 0x13b   : > { %v765_v56 = vadd.f32 %v763_v54, %v746_v41  ;;  %v766_v58 = vadd.f32 %v764_v3, %v747_v48  ;;  %v774_v18 = vsel %vm773_vm4, %v768_v50, %v770_v9  ;;  %v817_v41 = vrot.slane %v808_v20, %v1771_v29 }
 0x13c   : > { %v778_v60 = vsel %vm328_vm7, %v774_v18, 0.0  ;;  %1183 = vrot.lane.b32.xlu1 %v1909_v5, %s1682_s20  ;;  %1181 = vrot.lane.b32.xlu0 %v1895_v1, %s1682_s20  ;;  %v1247_v50 = vrot.slane %v1238_v62, %v1771_v29  ;;  %s2419_s20 = sld [smem:[#allocation3 + $0x2a]] }
 0x13d   : > { %v782_v8 = vmul.f32 %v781_v55, %v778_v60  ;;  %v888_v60 = vstv %s2290_s27 }
 0x13e   : > { %v787_v13 = vpop.permute.xlu1 %786  ;;  %v772_v52 = vpop.permute.xlu0 %771 }
 0x13f   : > { %v784_v12 = vadd.f32 %v782_v8, %v765_v56  ;;  %v775_v15 = vsel %vm773_vm4, %v770_v9, %v772_v52  ;;  %vm880_vm4 = vcmask 1022976  }
 0x140   : > { %v779_v0 = vsel %vm329_vm10, %v775_v15, 0.0  ;;  %1200 = vrot.lane.b32.xlu1 %v1895_v1, %s1683_s24  ;;  %1198 = vrot.lane.b32.xlu0 %v1899_v2, %s1683_s24 }
 0x141   : > { %v783_v30 = vmul.f32 %v781_v55, %v779_v0 }
 0x142   : > { %v791_v21 = vpop.permute.xlu1 %790  ;;  %v789_v26 = vpop.permute.xlu0 %788 }
 0x143   : > { %v785_v32 = vadd.f32 %v783_v30, %v766_v58  ;;  %v793_v57 = vsel %vm792_vm6, %v787_v13, %v789_v26  ;;  %v794_v17 = vsel %vm792_vm6, %v789_v26, %v791_v21  ;;  %vm2552_vm6 = vcmp.lt.s32.totalorder %v1940_v16, 13 }
 0x144   : > { %v797_v31 = vsel %vm2551_vm9, %v793_v57, 0.0  ;;  %v798_v63 = vsel %vm350_vm12, %v794_v17, 0.0  ;;  %1217 = vrot.lane.b32.xlu1 %v1899_v2, %s1684_s25  ;;  %1202 = vrot.lane.b32.xlu0 %v1909_v5, %s1683_s24  ;;  %vm899_vm9 = vcmask 941056   ;;  %s2501_s24 = sld [smem:[#allocation3 + $0x2f]] }
 0x145   : > { %v801_v10 = vmul.f32 %v800_v59, %v797_v31  ;;  %v802_v11 = vmul.f32 %v800_v59, %v798_v63  ;;  %v907_v59 = vstv %s2307_s30 }
 0x146   : > { %v839_v42 = vpop.permute.xlu1 %838  ;;  %v837_v23 = vpop.permute.xlu0 %836 }
 0x147   : > { %v803_v35 = vadd.f32 %v801_v10, %v784_v12  ;;  %v804_v7 = vadd.f32 %v802_v11, %v785_v32  ;;  %v843_v36 = vsel %vm842_vm0, %v837_v23, %v839_v42 }
 0x148   : > { %v847_v39 = vsel %vm399_vm15, %v843_v36, 0.0  ;;  %1221 = vrot.lane.b32.xlu1 %v1909_v5, %s1684_s25  ;;  %1219 = vrot.lane.b32.xlu0 %v1895_v1, %s1684_s25  ;;  %s2503_s25 = sld [smem:[#allocation3 + $0x30]] }
 0x149   : > { %v820_v4 = vadd.f32 %v813_v33, %v803_v35  ;;  %v851_v40 = vmul.f32 %v850_v43, %v847_v39  ;;  %v821_v53 = vadd.f32 %v817_v41, %v804_v7 }
 0x14a   : > { %v856_v6 = vpop.permute.xlu1 %855  ;;  %v841_v44 = vpop.permute.xlu0 %840 }
 0x14b   : > { %v853_v45 = vadd.f32 %v851_v40, %v820_v4  ;;  %v844_v46 = vsel %vm842_vm0, %v839_v42, %v841_v44  ;;  %vm918_vm0 = vcmask 932864   ;;  %v945_v44 = vstv %s1479_s6 }
 0x14c   : > { %v848_v47 = vsel %vm400_vm3, %v844_v46, 0.0  ;;  %1267 = vrot.lane.b32.xlu1 %v1895_v1, %s1685_s28  ;;  %1265 = vrot.lane.b32.xlu0 %v1899_v2, %s1685_s28 }
 0x14d   : > { %v852_v48 = vmul.f32 %v850_v43, %v848_v47 }
 0x14e   : > { %v860_v49 = vpop.permute.xlu1 %859  ;;  %v858_v38 = vpop.permute.xlu0 %857 }
 0x14f   : > { %v854_v51 = vadd.f32 %v852_v48, %v821_v53  ;;  %v862_v54 = vsel %vm861_vm5, %v856_v6, %v858_v38  ;;  %v863_v3 = vsel %vm861_vm5, %v858_v38, %v860_v49  ;;  %vm937_vm5 = vcmask 924672  }
 0x150   : > { %v866_v9 = vsel %vm420_vm1, %v862_v54, 0.0  ;;  %v867_v55 = vsel %vm421_vm13, %v863_v3, 0.0  ;;  %1252 = vrot.lane.b32.xlu1 %v1243_v61, %s1686_s29  ;;  %1269 = vrot.lane.b32.xlu0 %v1909_v5, %s1685_s28 }
 0x151   : > { %v870_v56 = vmul.f32 %v869_v37, %v866_v9  ;;  %v871_v58 = vmul.f32 %v869_v37, %v867_v55 }
 0x152   : > { %v877_v18 = vpop.permute.xlu1 %876  ;;  %v875_v8 = vpop.permute.xlu0 %874 }
 0x153   : > { %v872_v13 = vadd.f32 %v870_v56, %v853_v45  ;;  %v873_v52 = vadd.f32 %v871_v58, %v854_v51  ;;  %v881_v24 = vsel %vm880_vm4, %v875_v8, %v877_v18 }
 0x154   : > { %v885_v14 = vsel %vm2552_vm6, %v881_v24, 0.0  ;;  %1256 = vrot.lane.b32.xlu1 %v1251_v28, %s1686_s29  ;;  %1254 = vrot.lane.b32.xlu0 %v1247_v50, %s1686_s29  ;;  %vm985_vm6 = vcmask 908288   ;;  %v993_v28 = vstv %s1481_s7  ;;  %s181_s29 = scalar_lea.vmem %s2541_s2, %s1449_s26 }
 0x155   : > { %v889_v27 = vmul.f32 %v888_v60, %v885_v14 }
 0x156   : > { %v894_v12 = vpop.permute.xlu1 %893  ;;  %v879_v29 = vpop.permute.xlu0 %878 }
 0x157   : > { %v891_v15 = vadd.f32 %v889_v27, %v872_v13  ;;  %v882_v0 = vsel %vm880_vm4, %v877_v18, %v879_v29  ;;  %vm2553_vm4 = vcmp.ge.s32.totalorder %v1940_v16, 1 }
 0x158   : > { %v886_v30 = vsel %vm442_vm14, %v882_v0, 0.0  ;;  %1286 = vrot.lane.b32.xlu1 %v1895_v1, %s1687_s4  ;;  %1284 = vrot.lane.b32.xlu0 %v1899_v2, %s1687_s4 }
 0x159   : > { %v890_v20 = vmul.f32 %v888_v60, %v886_v30 }
 0x15a   : > { %v898_v21 = vpop.permute.xlu1 %897  ;;  %v896_v26 = vpop.permute.xlu0 %895 }
 0x15b   : > { %v892_v32 = vadd.f32 %v890_v20, %v873_v52  ;;  %v900_v57 = vsel %vm899_vm9, %v894_v12, %v896_v26  ;;  %v901_v17 = vsel %vm899_vm9, %v896_v26, %v898_v21  ;;  %vm972_vm9 = vcmask 916480  }
 0x15c   : > { %v904_v31 = vsel %vm294_vm8, %v900_v57, 0.0  ;;  %v905_v63 = vsel %vm295_vm11, %v901_v17, 0.0  ;;  %1303 = vrot.lane.b32.xlu1 %v1899_v2, %s1688_s5  ;;  %1288 = vrot.lane.b32.xlu0 %v1909_v5, %s1687_s4 }
 0x15d   : > { %v908_v10 = vmul.f32 %v907_v59, %v904_v31  ;;  %v909_v11 = vmul.f32 %v907_v59, %v905_v63 }
 0x15e   : > { %v915_v33 = vpop.permute.xlu1 %914  ;;  %v913_v42 = vpop.permute.xlu0 %912 }
 0x15f   : > { %v910_v43 = vadd.f32 %v908_v10, %v891_v15  ;;  %v911_v23 = vadd.f32 %v909_v11, %v892_v32  ;;  %v919_v35 = vsel %vm918_vm0, %v913_v42, %v915_v33 }
 0x160   : > { %v923_v7 = vsel %vm328_vm7, %v919_v35, 0.0  ;;  %1307 = vrot.lane.b32.xlu1 %v1909_v5, %s1688_s5  ;;  %1305 = vrot.lane.b32.xlu0 %v1895_v1, %s1688_s5 }
 0x161   : > { %v927_v2 = vmul.f32 %v926_v34, %v923_v7 }
 0x162   : > { %v932_v36 = vpop.permute.xlu1 %931  ;;  %v917_v39 = vpop.permute.xlu0 %916 }
 0x163   : > { %v929_v62 = vadd.f32 %v927_v2, %v910_v43  ;;  %v920_v4 = vsel %vm918_vm0, %v915_v33, %v917_v39  ;;  %vm1004_vm0 = vcmask 900096  }
 0x164   : > { %v924_v40 = vsel %vm329_vm10, %v920_v4, 0.0 }
 0x165   : > { %v928_v41 = vmul.f32 %v926_v34, %v924_v40 }
 0x166   : > { %v936_v6 = vpop.permute.xlu1 %935  ;;  %v934_v45 = vpop.permute.xlu0 %933 }
 0x167   : > { %v930_v46 = vadd.f32 %v928_v41, %v911_v23  ;;  %v938_v47 = vsel %vm937_vm5, %v932_v36, %v934_v45  ;;  %v939_v61 = vsel %vm937_vm5, %v934_v45, %v936_v6  ;;  %vm1023_vm5 = vcmask 891904  }
 0x168   : > { %v942_v1 = vsel %vm2553_vm4, %v938_v47, 0.0  ;;  %v943_v5 = vsel %vm350_vm12, %v939_v61, 0.0  ;;  %vm1042_vm4 = vcmask 809984  }
 0x169   : > { %v946_v53 = vmul.f32 %v945_v44, %v942_v1  ;;  %v947_v48 = vmul.f32 %v945_v44, %v943_v5 }
 0x16a   : > { %v982_v49 = vpop.permute.xlu1 %981  ;;  %v980_v37 = vpop.permute.xlu0 %979 }
 0x16b   : > { %v986_v38 = vsel %vm985_vm6, %v980_v37, %v982_v49  ;;  %v948_v51 = vadd.f32 %v946_v53, %v929_v62  ;;  %v949_v54 = vadd.f32 %v947_v48, %v930_v46  ;;  %v1012_v46 = vstv %s2365_s8 }
 0x16c   : > { %v990_v50 = vsel %vm399_vm15, %v986_v38, 0.0 }
 0x16d   : > { %v994_v13 = vmul.f32 %v993_v28, %v990_v50 }
 0x16e   : > { %v967_v3 = vpop.permute.xlu1 %966  ;;  %v984_v9 = vpop.permute.xlu0 %983 }
 0x16f   : > { %v987_v55 = vsel %vm985_vm6, %v982_v49, %v984_v9  ;;  %vm1061_vm6 = vcmask 801792   ;;  %v1031_v49 = vstv %s2371_s12 }
 0x170   : > { %v991_v56 = vsel %vm400_vm3, %v987_v55, 0.0  ;;  %v1050_v55 = vstv %s2373_s14 }
 0x171   : > { %v995_v52 = vmul.f32 %v993_v28, %v991_v56 }
 0x172   : > { %v971_v58 = vpop.permute.xlu1 %970  ;;  %v969_v18 = vpop.permute.xlu0 %968 }
 0x173   : > { %v973_v60 = vsel %vm972_vm9, %v967_v3, %v969_v18  ;;  %v974_v8 = vsel %vm972_vm9, %v969_v18, %v971_v58  ;;  %vm1080_vm9 = vcmask 793600  }
 0x174   : > { %v977_v24 = vadd.f32 %v973_v60, %v948_v51  ;;  %v978_v14 = vadd.f32 %v974_v8, %v949_v54 }
 0x176   : > { %v2343_v27 = vadd.f32 %v994_v13, %v977_v24  ;;  %v2345_v12 = vadd.f32 %v995_v52, %v978_v14  ;;  %v1001_v29 = vpop.permute.xlu1 %1000  ;;  %v999_v15 = vpop.permute.xlu0 %998  ;;  %v1069_v52 = vstv %s2379_s15 }
 0x177   : > { %v1005_v4 = vsel %vm1004_vm0, %v999_v15, %v1001_v29 }
 0x178   : > { %v1009_v47 = vsel %vm420_vm1, %v1005_v4, 0.0 }
 0x179   : > { %v1013_v51 = vmul.f32 %v1012_v46, %v1009_v47 }
 0x17a   : > { %v1018_v0 = vpop.permute.xlu1 %1017  ;;  %v1003_v30 = vpop.permute.xlu0 %1002 }
 0x17b   : > { %v1006_v40 = vsel %vm1004_vm0, %v1001_v29, %v1003_v30  ;;  %vm2554_vm0 = vcmp.lt.s32.totalorder %v1940_v16, 13  ;;  %v1015_v29 = vadd.f32 %v1013_v51, %v2343_v27  ;;  %v1193_v51 = vstv %s2419_s20 }
 0x17c   : > { %v1010_v61 = vsel %vm421_vm13, %v1006_v40, 0.0 }
 0x17d   : > { %v1014_v54 = vmul.f32 %v1012_v46, %v1010_v61 }
 0x17e   : > { %v1022_v20 = vpop.permute.xlu1 %1021  ;;  %v1020_v21 = vpop.permute.xlu0 %1019 }
 0x17f   : > { %v1024_v44 = vsel %vm1023_vm5, %v1018_v0, %v1020_v21  ;;  %v1025_v45 = vsel %vm1023_vm5, %v1020_v21, %v1022_v20  ;;  %v1016_v15 = vadd.f32 %v1014_v54, %v2345_v12  ;;  %v1088_v20 = vstv %s2386_s16 }
 0x180   : > { %v1028_v37 = vsel %vm2554_vm0, %v1024_v44, 0.0  ;;  %v1029_v38 = vsel %vm442_vm14, %v1025_v45, 0.0  ;;  %vm2555_vm5 = vcmp.ge.s32.totalorder %v1940_v16, 1  ;;  %v1155_v12 = vstv %s2399_s18 }
 0x181   : > { %v1032_v56 = vmul.f32 %v1031_v49, %v1028_v37  ;;  %v1033_v58 = vmul.f32 %v1031_v49, %v1029_v38  ;;  %vm1166_vm0 = vcmask 760832   ;;  %v1174_v45 = vstv %s2406_s19 }
 0x182   : > { %v1039_v59 = vpop.permute.xlu1 %1038  ;;  %v1037_v26 = vpop.permute.xlu0 %1036 }
 0x183   : > { %v1043_v1 = vsel %vm1042_vm4, %v1037_v26, %v1039_v59  ;;  %v1034_v26 = vadd.f32 %v1032_v56, %v1015_v29 }
 0x184   : > { %v1047_v28 = vsel %vm294_vm8, %v1043_v1, 0.0 }
 0x185   : > { %v1051_v0 = vmul.f32 %v1050_v55, %v1047_v28 }
 0x186   : > { %v1056_v32 = vpop.permute.xlu1 %1055  ;;  %v1041_v57 = vpop.permute.xlu0 %1040 }
 0x187   : > { %v1044_v5 = vsel %vm1042_vm4, %v1039_v59, %v1041_v57  ;;  %vm1128_vm4 = vcmask 777216  }
 0x188   : > { %v1048_v50 = vsel %vm295_vm11, %v1044_v5, 0.0 }
 0x189   : > { %v1052_v30 = vmul.f32 %v1050_v55, %v1048_v50 }
 0x18a   : > { %v1060_v17 = vpop.permute.xlu1 %1059  ;;  %v1058_v31 = vpop.permute.xlu0 %1057 }
 0x18b   : > { %v1062_v3 = vsel %vm1061_vm6, %v1056_v32, %v1058_v31  ;;  %v1063_v9 = vsel %vm1061_vm6, %v1058_v31, %v1060_v17  ;;  %v1035_v32 = vadd.f32 %v1033_v58, %v1016_v15  ;;  %vm1115_vm6 = vcmask 785408  }
 0x18c   : > { %v1066_v24 = vsel %vm328_vm7, %v1062_v3, 0.0  ;;  %v1067_v14 = vsel %vm329_vm10, %v1063_v9, 0.0 }
 0x18d   : > { %v1070_v57 = vmul.f32 %v1069_v52, %v1066_v24  ;;  %v1071_v17 = vmul.f32 %v1069_v52, %v1067_v14  ;;  %v1212_v52 = vstv %s2434_s21 }
 0x18e   : > { %v1077_v63 = vpop.permute.xlu1 %1076  ;;  %v1075_v10 = vpop.permute.xlu0 %1074 }
 0x18f   : > { %v1081_v18 = vsel %vm1080_vm9, %v1075_v10, %v1077_v63  ;;  %v1053_v10 = vadd.f32 %v1051_v0, %v1034_v26 }
 0x190   : > { %v1085_v21 = vsel %vm2555_vm5, %v1081_v18, 0.0  ;;  %vm1185_vm5 = vcmask 678912  }
 0x191   : > { %v1089_v4 = vmul.f32 %v1088_v20, %v1085_v21  ;;  %v1072_v46 = vadd.f32 %v1070_v57, %v1053_v10 }
 0x192   : > { %v2347_v11 = vpop.permute.xlu1 %1122  ;;  %v1079_v33 = vpop.permute.xlu0 %1078 }
 0x193   : > { %v1082_v60 = vsel %vm1080_vm9, %v1077_v63, %v1079_v33  ;;  %v1136_v63 = vstv %s2397_s17  ;;  %vm1147_vm9 = vcmask 769024   ;;  %v1054_v33 = vadd.f32 %v1052_v30, %v1035_v32 }
 0x194   : > { %v1086_v59 = vsel %vm350_vm12, %v1082_v60, 0.0 }
 0x195   : > { %v1090_v40 = vmul.f32 %v1088_v20, %v1086_v59  ;;  %v1073_v47 = vadd.f32 %v1071_v17, %v1054_v33  ;;  %v1231_v17 = vstv %s2464_s22 }
 0x196   : > { %v2349_v34 = vpop.permute.xlu1 %1126  ;;  %v2351_v42 = vpop.permute.xlu0 %1124 }
 0x197   : > { %v1129_v44 = vsel %vm1128_vm4, %v2347_v11, %v2351_v42  ;;  %v1130_v61 = vsel %vm1128_vm4, %v2351_v42, %v2349_v34  ;;  %v1091_v42 = vadd.f32 %v1089_v4, %v1072_v46  ;;  %vm1204_vm4 = vcmask 670720  }
 0x198   : > { %v1133_v34 = vsel %vm399_vm15, %v1129_v44, 0.0 }
 0x199   : > { %v1137_v28 = vmul.f32 %v1136_v63, %v1133_v34 }
 0x19a   : > { %v2353_v43 = vpop.permute.xlu1 %1111  ;;  %v2355_v23 = vpop.permute.xlu0 %1109 }
 0x19b   : > { %v1116_v11 = vsel %vm1115_vm6, %v2355_v23, %v2353_v43  ;;  %v1134_v23 = vsel %vm400_vm3, %v1130_v61, 0.0 }
 0x19e   : > { %v2357_v35 = vpop.permute.xlu1 %1141  ;;  %v2359_v7 = vpop.permute.xlu0 %1113 }
 0x19f   : > { %v1117_v37 = vsel %vm1115_vm6, %v2353_v43, %v2359_v7  ;;  %vm2556_vm6 = vcmp.lt.s32.totalorder %v1940_v16, 13 }
 0x1a2   : > { %v2361_v2 = vpop.permute.xlu1 %1145  ;;  %v2363_v36 = vpop.permute.xlu0 %1143 }
 0x1a3   : > { %v1148_v1 = vsel %vm1147_vm9, %v2357_v35, %v2363_v36  ;;  %v1149_v38 = vsel %vm1147_vm9, %v2363_v36, %v2361_v2  ;;  %v1092_v35 = vadd.f32 %v1090_v40, %v1073_v47  ;;  %v1120_v2 = vadd.f32 %v1116_v11, %v1091_v42 }
 0x1a4   : > { %v1152_v43 = vsel %vm420_vm1, %v1148_v1, 0.0  ;;  %v1153_v3 = vsel %vm421_vm13, %v1149_v38, 0.0  ;;  %vm1223_vm9 = vcmask 662528   ;;  %v1279_v42 = vstv %s2495_s23 }
 0x1a5   : > { %v1121_v36 = vadd.f32 %v1117_v37, %v1092_v35  ;;  %v1156_v56 = vmul.f32 %v1155_v12, %v1152_v43  ;;  %v1157_v18 = vmul.f32 %v1155_v12, %v1153_v3 }
 0x1a6   : > { %v2367_v39 = vpop.permute.xlu1 %1162  ;;  %v2369_v62 = vpop.permute.xlu0 %1160 }
 0x1a7   : > { %v1167_v54 = vsel %vm1166_vm0, %v2369_v62, %v2367_v39 }
 0x1a8   : > { %v1171_v50 = vsel %vm2556_vm6, %v1167_v54, 0.0 }
 0x1a9   : > { %v1175_v14 = vmul.f32 %v1174_v45, %v1171_v50 }
 0x1aa   : > { %v2375_v41 = vpop.permute.xlu1 %1179  ;;  %v2377_v6 = vpop.permute.xlu0 %1164 }
 0x1ab   : > { %v1168_v7 = vsel %vm1166_vm0, %v2367_v39, %v2377_v6  ;;  %v1138_v6 = vmul.f32 %v1136_v63, %v1134_v23 }
 0x1ac   : > { %v1172_v58 = vsel %vm442_vm14, %v1168_v7, 0.0  ;;  %v1298_v7 = vstv %s2501_s24 }
 0x1ad   : > { %v1176_v30 = vmul.f32 %v1174_v45, %v1172_v58 }
 0x1ae   : > { %v2388_v53 = vpop.permute.xlu1 %1183  ;;  %v2390_v48 = vpop.permute.xlu0 %1181 }
 0x1af   : > { %v1186_v62 = vsel %vm1185_vm5, %v2375_v41, %v2390_v48  ;;  %v1187_v39 = vsel %vm1185_vm5, %v2390_v48, %v2388_v53  ;;  %v1139_v53 = vadd.f32 %v1137_v28, %v1120_v2  ;;  %v1140_v48 = vadd.f32 %v1138_v6, %v1121_v36 }
 0x1b0   : > { %v1190_v60 = vsel %vm294_vm8, %v1186_v62, 0.0  ;;  %v1191_v29 = vsel %vm295_vm11, %v1187_v39, 0.0  ;;  %vm2557_vm8 = vcmp.ge.s32.totalorder %v1940_v16, 1  ;;  %vm1258_vm11 = vcmask 654336  }
 0x1b1   : > { %v1158_v59 = vadd.f32 %v1156_v56, %v1139_v53  ;;  %v1194_v26 = vmul.f32 %v1193_v51, %v1190_v60  ;;  %v1159_v32 = vadd.f32 %v1157_v18, %v1140_v48  ;;  %v1195_v57 = vmul.f32 %v1193_v51, %v1191_v29 }
 0x1b2   : > { %v2410_v8 = vpop.permute.xlu1 %1200  ;;  %v2412_v13 = vpop.permute.xlu0 %1198 }
 0x1b3   : > { %v1205_v41 = vsel %vm1204_vm4, %v2412_v13, %v2410_v8  ;;  %v1178_v4 = vadd.f32 %v1176_v30, %v1159_v32 }
 0x1b4   : > { %v1209_v13 = vsel %vm328_vm7, %v1205_v41, 0.0  ;;  %vm1271_vm7 = vcmask 646144   ;;  %v1317_v41 = vstv %s2503_s25 }
 0x1b5   : > { %v1213_v63 = vmul.f32 %v1212_v52, %v1209_v13  ;;  %v1197_v45 = vadd.f32 %v1195_v57, %v1178_v4 }
 0x1b6   : > { %v1218_v31 = vpop.permute.xlu1 %1217  ;;  %v1203_v27 = vpop.permute.xlu0 %1202 }
 0x1b7   : > { %v1206_v24 = vsel %vm1204_vm4, %v2410_v8, %v1203_v27  ;;  %v1177_v27 = vadd.f32 %v1175_v14, %v1158_v59 }
 0x1b8   : > { %v1210_v8 = vsel %vm329_vm10, %v1206_v24, 0.0  ;;  %vm1290_vm10 = vcmask 637952  }
 0x1b9   : > { %v1214_v40 = vmul.f32 %v1212_v52, %v1210_v8  ;;  %v1196_v44 = vadd.f32 %v1194_v26, %v1177_v27 }
 0x1ba   : > { %v1222_v5 = vpop.permute.xlu1 %1221  ;;  %v1220_v49 = vpop.permute.xlu0 %1219 }
 0x1bb   : > { %v1224_v20 = vsel %vm1223_vm9, %v1218_v31, %v1220_v49  ;;  %v1225_v21 = vsel %vm1223_vm9, %v1220_v49, %v1222_v5  ;;  %v1215_v61 = vadd.f32 %v1213_v63, %v1196_v44  ;;  %v1216_v49 = vadd.f32 %v1214_v40, %v1197_v45 }
 0x1bc   : > { %v1228_v12 = vsel %vm2557_vm8, %v1224_v20, 0.0  ;;  %v1229_v31 = vsel %vm350_vm12, %v1225_v21, 0.0  ;;  %vm1309_vm12 = vcmask 629760  }
 0x1bd   : > { %v1232_v46 = vmul.f32 %v1231_v17, %v1228_v12  ;;  %v1233_v47 = vmul.f32 %v1231_v17, %v1229_v31 }
 0x1be   : > { %v1268_v9 = vpop.permute.xlu1 %1267  ;;  %v1266_v55 = vpop.permute.xlu0 %1265 }
 0x1bf   : > { %v1272_v11 = vsel %vm1271_vm7, %v1266_v55, %v1268_v9  ;;  %v1234_v35 = vadd.f32 %v1232_v46, %v1215_v61  ;;  %v1235_v54 = vadd.f32 %v1233_v47, %v1216_v49 }
 0x1c0   : > { %v1276_v23 = vsel %vm399_vm15, %v1272_v11, 0.0  ;;  %vm2558_vm15 = vmmov %vm2556_vm6 }
 0x1c1   : > { %v1280_v50 = vmul.f32 %v1279_v42, %v1276_v23 }
 0x1c2   : > { %v1253_v15 = vpop.permute.xlu1 %1252  ;;  %v1270_v0 = vpop.permute.xlu0 %1269 }
 0x1c3   : > { %v1273_v37 = vsel %vm1271_vm7, %v1268_v9, %v1270_v0 }
 0x1c4   : > { %v1277_v43 = vsel %vm400_vm3, %v1273_v37, 0.0 }
 0x1c5   : > { %v1281_v39 = vmul.f32 %v1279_v42, %v1277_v43 }
 0x1c6   : > { %v1257_v10 = vpop.permute.xlu1 %1256  ;;  %v1255_v33 = vpop.permute.xlu0 %1254 }
 0x1c7   : > { %v1259_v51 = vsel %vm1258_vm11, %v1253_v15, %v1255_v33  ;;  %v1260_v34 = vsel %vm1258_vm11, %v1255_v33, %v1257_v10 }
 0x1c8   : > { %v1263_v62 = vadd.f32 %v1259_v51, %v1234_v35  ;;  %v1264_v9 = vadd.f32 %v1260_v34, %v1235_v54 }
 0x1ca   : > { %v1287_v1 = vpop.permute.xlu1 %1286  ;;  %v1285_v5 = vpop.permute.xlu0 %1284  ;;  %v1282_v60 = vadd.f32 %v1280_v50, %v1263_v62  ;;  %v1283_v52 = vadd.f32 %v1281_v39, %v1264_v9 }
 0x1cb   : > { %v1291_v38 = vsel %vm1290_vm10, %v1285_v5, %v1287_v1 }
 0x1cc   : > { %v1295_v2 = vsel %vm420_vm1, %v1291_v38, 0.0 }
 0x1cd   : > { %v1299_v6 = vmul.f32 %v1298_v7, %v1295_v2 }
 0x1ce   : > { %v1304_v36 = vpop.permute.xlu1 %1303  ;;  %v1289_v3 = vpop.permute.xlu0 %1288 }
 0x1cf   : > { %v1292_v55 = vsel %vm1290_vm10, %v1287_v1, %v1289_v3  ;;  %v1301_v29 = vadd.f32 %v1299_v6, %v1282_v60 }
 0x1d0   : > { %v1296_v28 = vsel %vm421_vm13, %v1292_v55, 0.0 }
 0x1d1   : > { %v1300_v56 = vmul.f32 %v1298_v7, %v1296_v28 }
 0x1d2   : > { %v1308_v58 = vpop.permute.xlu1 %1307  ;;  %v1306_v18 = vpop.permute.xlu0 %1305 }
 0x1d3   : > { %v1310_v24 = vsel %vm1309_vm12, %v1304_v36, %v1306_v18  ;;  %v1311_v53 = vsel %vm1309_vm12, %v1306_v18, %v1308_v58  ;;  %v1302_v15 = vadd.f32 %v1300_v56, %v1283_v52 }
 0x1d4   : > { %v1314_v48 = vsel %vm2558_vm15, %v1310_v24, 0.0  ;;  %v1315_v14 = vsel %vm442_vm14, %v1311_v53, 0.0 }
 0x1d5   : > { %v1318_v0 = vmul.f32 %v1317_v41, %v1314_v48  ;;  %v1319_v30 = vmul.f32 %v1317_v41, %v1315_v14 }
 0x1d7   : > { %v1320_v13 = vadd.f32 %v1318_v0, %v1301_v29  ;;  %v1321_v20 = vadd.f32 %v1319_v30, %v1302_v15 }
 0x1d9   : > { %v1322_v21 = vsub.f32 0.0, %v1320_v13  ;;  %v1323_v59 = vsub.f32 0.0, %v1321_v20 }
 0x1db   : > { %v1324_v26 = vmul.f32 1.442695, %v1322_v21  ;;  %v1326_v8 = vmul.f32 1.442695, %v1323_v59 }
 0x1dd   : > { %1587 = vpow2.f32 %v1324_v26 }
 0x1de   : > { %1589 = vpow2.f32 %v1326_v8 }
 0x1e7   : > { %v1588_v32 = vpop.eup %1587 }
 0x1e8   : > { %v1590_v57 = vpop.eup %1589  ;;  %v1328_v16 = vadd.f32 1.0, %v1588_v32 }
 0x1e9   : > { %v1329_v17 = vadd.f32 1.0, %v1590_v57 }
 0x1ea   : > { %1591 = vrcp.f32 %v1328_v16 }
 0x1eb   : > { %1593 = vrcp.f32 %v1329_v17 }
 0x1f4   : > { %v1592_v19 = vpop.eup %1591 }
 0x1f5   : > { %v1594_v27 = vpop.eup %1593 }
 0x1f6   : > { %v1336_v63 = vcombine.low %v1592_v19, %v1594_v27 }
 0x1f8   : > { %v1343_v12 = vrot.slane %v1336_v63, %v1756_v22 }
 0x1fa   : > { %v1350_v31 = vrot.slane %v1343_v12, %v1756_v22 }
 0x1fc   : > { %1356 = vst.msk [vmem:[%s181_s29] sm:$0x3] %vm1760_vm2, %v1350_v31 }
 0x1fd PF: > { %s13_s11 = sadd.s32 1, %s1636_s11   ;;  %s2559_s9 = smov %s1632_s10 }
 0x1fe   : > { %p10_p2 = scmp.ge.s32.totalorder %s13_s11, 4   ;;  %s2560_s10 = smov %s2562_s13 }
 0x200   :  { %12 = sbr.rel (!%p10_p2) target bundleno = 2 (0x2), region = 75 }
 0x207   :  { %1376 = vsyncpa [#allocation4], 1 }
 0x208   :  { %1378 = vsyncpa [#allocation4 + $0x1], 1 }

</bundles_post_ra>
